<compile_context>
chip_gen: v7x
topology: tpu7x:2x2x1
jax: 0.10.0
libtpu: 0.0.40
codegen_flags: <defaults>
</compile_context>

<pallas_src>
import functools
import math

import jax
import jax.numpy as jnp
from jax.experimental import pallas as pl
from jax.experimental.pallas import tpu as pltpu


# ----------------------------------------------------------------------------- kernel

def gcn_kernel(x_ref, adj_ref,
               w1_ref, b1_ref,
               w2_ref, b2_ref,
               w3_ref, b3_ref,
               wl_ref, bl_ref,
               out_ref, *, mxu_dtype):
    Gb, N, nfeat = x_ref.shape
    c_pad = out_ref.shape[-1]

    adj = adj_ref[...].astype(mxu_dtype)          # (Gb, N, N)

    def mxu(a, b):
        # Stacked (Gb*N, C) @ (C, C') feature contraction; f32 accumulation on MXU.
        return jnp.dot(a.astype(mxu_dtype), b.astype(mxu_dtype),
                       preferred_element_type=jnp.float32)

    def adj_mm(h_flat):
        # Per-graph adjacency contraction (adj is block-diagonal over the batch).
        c = h_flat.shape[-1]
        h = h_flat.reshape(Gb, N, c).astype(mxu_dtype)   # N % 8 == 0 -> layout no-op
        ah = jnp.einsum("gij,gjc->gic", adj, h, preferred_element_type=jnp.float32)
        return ah.reshape(Gb * N, c)

    def graph_conv(h_flat, w, b):
        # torch: spmm(adj, mm(h, W)) + b.  Associativity: contract adj against the
        # narrower feature width so the N^2-scale matmul stays as small as possible.
        in_f, out_f = w.shape
        if in_f <= out_f:
            return mxu(adj_mm(h_flat), w) + b
        return adj_mm(mxu(h_flat, w)) + b

    # Stack all graphs of this step into >=128-row matmuls.
    x_flat = x_ref[...].reshape(Gb * N, nfeat)

    # gc1 -> relu
    h1 = jnp.maximum(graph_conv(x_flat, w1_ref[...], b1_ref[...]), 0.0)
    # TODO(synk): dropout is identity in eval/inference mode; training-mode dropout
    #             (stateful PRNG mask) is not implemented.
    # gc2 -> relu
    h2 = jnp.maximum(graph_conv(h1, w2_ref[...], b2_ref[...]), 0.0)
    # gc3 (no relu)
    h3 = graph_conv(h2, w3_ref[...], b3_ref[...])

    # lin(cat([h1, h2, h3], dim=1)) via split dots over row-slices of the lane-padded
    # head weight (identical to the concatenated matmul, no lane-dim concat needed).
    nhid = h1.shape[1]
    wl = wl_ref[...]                              # (2*nhid + nout, c_pad)
    logits = (mxu(h1, wl[:nhid, :])
              + mxu(h2, wl[nhid:2 * nhid, :])
              + mxu(h3, wl[2 * nhid:, :])
              + bl_ref[...])                      # pad lanes carry bias -1e30

    # log_softmax over classes (lane dim), max-shifted for stability; pad lanes never
    # win the max and contribute exactly 0 to the denominator (exp underflows to 0).
    m = jnp.max(logits, axis=1, keepdims=True)
    shifted = logits - m
    lse = jnp.log(jnp.sum(jnp.exp(shifted), axis=1, keepdims=True))
    out_ref[...] = (shifted - lse).reshape(Gb, N, c_pad)


# ----------------------------------------------------------------------------- sizing

def _round_up(v, m):
    return (v + m - 1) // m * m


def _padded_f32_bytes(rows, cols):
    # VMEM footprint of a 2-D f32 tile after (8, 128) padding.
    return _round_up(rows, 8) * _round_up(cols, 128) * 4


def _physical_vmem_bytes():
    # Per-core physical VMEM; conservative v7x value (64 MiB) if the query fails.
    try:
        return int(pltpu.get_tpu_info().vmem_capacity_bytes)
    except Exception:
        return 64 << 20


def _default_graphs_per_step(G):
    # v7x has 2 TensorCores per chip: split the graph batch across them via the
    # "parallel" grid axis.  v5e/v6e (single TC): one step, no per-step overhead.
    try:
        kind = jax.devices()[0].device_kind.lower()
    except Exception:
        kind = ""
    if ("v7" in kind or "7x" in kind) and G >= 2 and G % 2 == 0:
        return G // 2
    return G


def _vmem_limit_bytes(Gb, N, nfeat, nhid, nout, c_pad):
    lin_in = 2 * nhid + nout
    # Per-step blocks (double-buffered by the Pallas pipeline).
    blocks = 2 * Gb * (_padded_f32_bytes(N, N)
                       + _padded_f32_bytes(N, nfeat)
                       + _padded_f32_bytes(N, c_pad))
    weights = 2 * (_padded_f32_bytes(nfeat, nhid) + _padded_f32_bytes(1, nhid)
                   + _padded_f32_bytes(nhid, nhid) + _padded_f32_bytes(1, nhid)
                   + _padded_f32_bytes(nhid, nout) + _padded_f32_bytes(1, nout)
                   + _padded_f32_bytes(lin_in, c_pad) + _padded_f32_bytes(1, c_pad))
    # Live f32 temporaries (stacked activations, adj products, logits/softmax).
    M = Gb * N
    acts = (4 * _padded_f32_bytes(M, nhid)
            + 2 * _padded_f32_bytes(M, nout)
            + 3 * _padded_f32_bytes(M, c_pad)
            + Gb * _padded_f32_bytes(N, N))       # bf16 adj copy bound
    est = blocks + weights + acts + (4 << 20)     # compiler-scratch headroom

    cap = (_physical_vmem_bytes() * 3) // 4       # leave headroom for internal scratch
    if est > cap:
        raise ValueError(
            f"Estimated VMEM footprint {est >> 20} MiB exceeds the per-core budget "
            f"{cap >> 20} MiB; reduce graphs_per_step or implement the HBM-streaming "
            f"adjacency path (see TODO at module top).")
    return int(min(max(est, 32 << 20), cap))


def _cost_estimate(G, N, nfeat, nhid, nout, c_pad):
    lin_in = 2 * nhid + nout
    fl = 0
    fl += 2 * N * N * min(nfeat, nhid) + 2 * N * nfeat * nhid   # gc1 (adj on narrow side)
    fl += 2 * N * N * nhid + 2 * N * nhid * nhid                # gc2
    fl += 2 * N * N * min(nhid, nout) + 2 * N * nhid * nout     # gc3
    fl += 2 * N * lin_in * c_pad                                # head (lane-padded)
    param_elems = (nfeat * nhid + nhid + nhid * nhid + nhid + nhid * nout + nout
                   + lin_in * c_pad + c_pad)
    return pl.CostEstimate(
        flops=G * fl,
        transcendentals=G * N * (c_pad + 1),                    # exp + log per row
        bytes_accessed=4 * (G * (N * N + N * nfeat + N * c_pad) + param_elems),
    )


# ----------------------------------------------------------------------------- wrappers

def gcn_synthetic_forward_batched(x, adj, params, *, graphs_per_step=None,
                                  mxu_dtype=jnp.float32):
    """x: (G, N, nfeat), adj: (G, N, N) row-normalized dense adjacency.

    mxu_dtype=jnp.bfloat16 casts MXU operands (adj, activations, weights) while
    keeping f32 accumulation — the recommended mode on v6e/v7x once validated.
    """
    G, N, nfeat = x.shape
    nhid = params["w1"].shape[1]
    nout = params["w3"].shape[1]
    nclass = params["bl"].shape[1]
    lin_in = 2 * nhid + nout
    c_pad = _round_up(nclass, 128)                # lane-dense logits / output store

    if graphs_per_step is None:
        graphs_per_step = _default_graphs_per_step(G)
    Gb = int(graphs_per_step)
    if G % Gb != 0:
        raise ValueError(f"graphs_per_step={Gb} must divide the number of graphs G={G}")
    steps = G // Gb

    # Lane-pad the head: zero weight columns + large-negative bias make the pad
    # classes exact no-ops in the max-shifted log_softmax.
    wl_pad = jnp.zeros((lin_in, c_pad), jnp.float32).at[:, :nclass].set(params["wl"])
    bl_pad = jnp.full((1, c_pad), -1e30, jnp.float32).at[:, :nclass].set(params["bl"])

    args = (x, adj,
            params["w1"], params["b1"],
            params["w2"], params["b2"],
            params["w3"], params["b3"],
            wl_pad, bl_pad)

    grid_spec = pltpu.PrefetchScalarGridSpec(
        num_scalar_prefetch=0,
        grid=(steps,),
        in_specs=[
            pl.BlockSpec((Gb, N, nfeat), lambda g: (g, 0, 0)),
            pl.BlockSpec((Gb, N, N), lambda g: (g, 0, 0)),
            # Weights / biases: constant block index => fetched once, VMEM-resident.
            pl.BlockSpec((nfeat, nhid), lambda g: (0, 0)),
            pl.BlockSpec((1, nhid), lambda g: (0, 0)),
            pl.BlockSpec((nhid, nhid), lambda g: (0, 0)),
            pl.BlockSpec((1, nhid), lambda g: (0, 0)),
            pl.BlockSpec((nhid, nout), lambda g: (0, 0)),
            pl.BlockSpec((1, nout), lambda g: (0, 0)),
            pl.BlockSpec((lin_in, c_pad), lambda g: (0, 0)),
            pl.BlockSpec((1, c_pad), lambda g: (0, 0)),
        ],
        out_specs=pl.BlockSpec((Gb, N, c_pad), lambda g: (g, 0, 0)),
    )

    out_pad = pl.pallas_call(
        functools.partial(gcn_kernel, mxu_dtype=mxu_dtype),
        out_shape=jax.ShapeDtypeStruct((G, N, c_pad), jnp.float32),
        grid_spec=grid_spec,
        compiler_params=pltpu.CompilerParams(
            dimension_semantics=("parallel",),   # independent graph blocks -> both TCs on v7x
            vmem_limit_bytes=_vmem_limit_bytes(Gb, N, nfeat, nhid, nout, c_pad)),
        cost_estimate=_cost_estimate(G, N, nfeat, nhid, nout, c_pad),
    )(*args)

    return out_pad[..., :nclass]


def gcn_synthetic_forward(x, adj, params, **kw):
    """Single-graph convenience wrapper (matches the PyTorch module's forward)."""
    return gcn_synthetic_forward_batched(x[None], adj[None], params, **kw)[0]


# ----------------------------------------------------------------------------- params / reference

def init_params(key, nfeat, nhid, nout, nclass):
    """Deterministic init mirroring the PyTorch module's parameter shapes.

    GraphConvolution: W in (in, out), b in (out,), uniform(-1/sqrt(out), 1/sqrt(out)).
    nn.Linear(nhid+nhid+nout, nclass): weight stored pre-transposed as (lin_in, nclass).
    """
    ks = jax.random.split(key, 8)

    def u(k, shape, stdv):
        return jax.random.uniform(k, shape, jnp.float32, minval=-stdv, maxval=stdv)

    s1 = 1.0 / math.sqrt(nhid)
    s2 = 1.0 / math.sqrt(nhid)
    s3 = 1.0 / math.sqrt(nout)
    lin_in = 2 * nhid + nout
    sl = 1.0 / math.sqrt(lin_in)

    return dict(
        w1=u(ks[0], (nfeat, nhid), s1), b1=u(ks[1], (1, nhid), s1),
        w2=u(ks[2], (nhid, nhid), s2), b2=u(ks[3], (1, nhid), s2),
        w3=u(ks[4], (nhid, nout), s3), b3=u(ks[5], (1, nout), s3),
        wl=u(ks[6], (lin_in, nclass), sl),
        bl=u(ks[7], (1, nclass), sl),
    )


def gcn_reference(x, adj, params):
    """Pure-JAX reference in the original torch op order (adj @ (h @ W))."""
    def gc(h, w, b):
        return adj @ (h @ w) + b
    h1 = jax.nn.relu(gc(x, params["w1"], params["b1"]))
    h2 = jax.nn.relu(gc(h1, params["w2"], params["b2"]))
    h3 = gc(h2, params["w3"], params["b3"])
    logits = jnp.concatenate([h1, h2, h3], axis=1) @ params["wl"] + params["bl"]
    return jax.nn.log_softmax(logits, axis=1)


# ----------------------------------------------------------------------------- main

if __name__ == "__main__":
    # A small batch of synthetic graphs: G graphs, N nodes, nfeat input features.
    G, N, nfeat, nhid, nout, nclass = 4, 32, 16, 32, 16, 4

    key = jax.random.PRNGKey(0)
    kx, ka, kp = jax.random.split(key, 3)

    x = jax.random.normal(kx, (G, N, nfeat), dtype=jnp.float32)

    # Symmetric adjacency with self-loops, row-normalized (typical GCN preprocessing).
    a = (jax.random.uniform(ka, (G, N, N)) < 0.15).astype(jnp.float32)
    a = jnp.maximum(a, jnp.swapaxes(a, 1, 2)) + jnp.eye(N, dtype=jnp.float32)
    adj = a / jnp.sum(a, axis=2, keepdims=True)

    params = init_params(kp, nfeat, nhid, nout, nclass)

    # Pure-JAX reference (original op order).
    ref = jax.vmap(lambda xi, ai: gcn_reference(xi, ai, params))(x, adj)

    # Default (generation-aware) batched kernel path.
    out = jax.block_until_ready(gcn_synthetic_forward_batched(x, adj, params))
    assert out.shape == (G, N, nclass)
    assert bool(jnp.all(jnp.isfinite(out)))
    assert bool(jnp.allclose(jnp.sum(jnp.exp(out), axis=-1), 1.0, atol=1e-5))
    assert bool(jnp.allclose(out, ref, atol=1e-3, rtol=1e-3))

    # Explicit two-step split (Gb = G/2) — the v7x-style sharding path.
    out2 = jax.block_until_ready(
        gcn_synthetic_forward_batched(x, adj, params, graphs_per_step=G // 2))
    assert bool(jnp.allclose(out2, ref, atol=1e-3, rtol=1e-3))

    # bf16 MXU-operand path (v6e/v7x lever), f32 accumulation; looser tolerance.
    out_bf16 = jax.block_until_ready(
        gcn_synthetic_forward_batched(x, adj, params, mxu_dtype=jnp.bfloat16))
    assert bool(jnp.all(jnp.isfinite(out_bf16)))
    assert bool(jnp.allclose(out_bf16, ref, atol=5e-2, rtol=5e-2))

    # Single-graph path (same semantics as the PyTorch module's forward).
    out1 = jax.block_until_ready(gcn_synthetic_forward(x[0], adj[0], params))
    assert bool(jnp.allclose(out1, ref[0], atol=1e-3, rtol=1e-3))

    print("KERNEL_OK")
</pallas_src>

<mosaic_0001>
module attributes {stable_mosaic.version = 11 : i64} {
  func.func @gcn_kernel(%arg0: i32, %arg1: memref<4x32x16xf32, #tpu.memory_space<vmem>>, %arg2: memref<4x32x32xf32, #tpu.memory_space<vmem>>, %arg3: memref<16x32xf32, #tpu.memory_space<vmem>>, %arg4: memref<1x32xf32, #tpu.memory_space<vmem>>, %arg5: memref<32x32xf32, #tpu.memory_space<vmem>>, %arg6: memref<1x32xf32, #tpu.memory_space<vmem>>, %arg7: memref<32x16xf32, #tpu.memory_space<vmem>>, %arg8: memref<1x16xf32, #tpu.memory_space<vmem>>, %arg9: memref<80x128xf32, #tpu.memory_space<vmem>>, %arg10: memref<1x128xf32, #tpu.memory_space<vmem>>, %arg11: memref<4x32x128xf32, #tpu.memory_space<vmem>>) attributes {dimension_semantics = [#tpu.dimension_semantics<parallel>], iteration_bounds = array<i64: 1>, scalar_prefetch = 0 : i64, scratch_operands = 0 : i64, tpu.core_type = #tpu.core_type<tc>, window_params = [{transform_indices = @transform_0, window_bounds = array<i64: 4, 32, 16>}, {transform_indices = @transform_1, window_bounds = array<i64: 4, 32, 32>}, {pipeline_mode = #tpu.pipeline_mode<synchronous>, transform_indices = @transform_2, window_bounds = array<i64: 16, 32>}, {pipeline_mode = #tpu.pipeline_mode<synchronous>, transform_indices = @transform_3, window_bounds = array<i64: 1, 32>}, {pipeline_mode = #tpu.pipeline_mode<synchronous>, transform_indices = @transform_4, window_bounds = array<i64: 32, 32>}, {pipeline_mode = #tpu.pipeline_mode<synchronous>, transform_indices = @transform_5, window_bounds = array<i64: 1, 32>}, {pipeline_mode = #tpu.pipeline_mode<synchronous>, transform_indices = @transform_6, window_bounds = array<i64: 32, 16>}, {pipeline_mode = #tpu.pipeline_mode<synchronous>, transform_indices = @transform_7, window_bounds = array<i64: 1, 16>}, {pipeline_mode = #tpu.pipeline_mode<synchronous>, transform_indices = @transform_8, window_bounds = array<i64: 80, 128>}, {pipeline_mode = #tpu.pipeline_mode<synchronous>, transform_indices = @transform_9, window_bounds = array<i64: 1, 128>}, {transform_indices = @transform_10, window_bounds = array<i64: 4, 32, 128>}]} {
    %c0 = arith.constant 0 : index
    %c0_0 = arith.constant 0 : index
    %c0_1 = arith.constant 0 : index
    %0 = vector.load %arg2[%c0, %c0_0, %c0_1] : memref<4x32x32xf32, #tpu.memory_space<vmem>>, vector<4x32x32xf32>
    %c0_2 = arith.constant 0 : index
    %c0_3 = arith.constant 0 : index
    %c0_4 = arith.constant 0 : index
    %1 = vector.load %arg1[%c0_2, %c0_3, %c0_4] : memref<4x32x16xf32, #tpu.memory_space<vmem>>, vector<4x32x16xf32>
    %2 = vector.shape_cast %1 : vector<4x32x16xf32> to vector<128x16xf32>
    %c0_5 = arith.constant 0 : index
    %c0_6 = arith.constant 0 : index
    %3 = vector.load %arg3[%c0_5, %c0_6] : memref<16x32xf32, #tpu.memory_space<vmem>>, vector<16x32xf32>
    %c0_7 = arith.constant 0 : index
    %c0_8 = arith.constant 0 : index
    %4 = vector.load %arg4[%c0_7, %c0_8] : memref<1x32xf32, #tpu.memory_space<vmem>>, vector<1x32xf32>
    %5 = vector.shape_cast %2 : vector<128x16xf32> to vector<4x32x16xf32>
    "tpu.trace_start"() <{level = 10 : i32, message = "gij,gjc->gic"}> : () -> ()
    %cst = arith.constant dense<0.000000e+00> : vector<4x32x16xf32>
    %6 = tpu.matmul %0, %5, %cst {dimension_numbers = #tpu.dot_dimension_numbers<[2], [1], [1], [2], [0, 0, 0, 1, 1, 2], [0], [0]>} : vector<4x32x32xf32>, vector<4x32x16xf32>, vector<4x32x16xf32> -> vector<4x32x16xf32>
    "tpu.trace_stop"() : () -> ()
    %7 = vector.shape_cast %6 : vector<4x32x16xf32> to vector<128x16xf32>
    %cst_9 = arith.constant dense<0.000000e+00> : vector<128x32xf32>
    %8 = tpu.matmul %7, %3, %cst_9 {dimension_numbers = #tpu.dot_dimension_numbers<[1], [0], [0], [1], [0, 0, 1, 1], [], []>} : vector<128x16xf32>, vector<16x32xf32>, vector<128x32xf32> -> vector<128x32xf32>
    %9 = vector.broadcast %4 : vector<1x32xf32> to vector<128x32xf32>
    %10 = arith.addf %8, %9 : vector<128x32xf32>
    %cst_10 = arith.constant 0.000000e+00 : f32
    %11 = vector.broadcast %cst_10 : f32 to vector<128x32xf32>
    %12 = arith.maximumf %10, %11 : vector<128x32xf32>
    %c0_11 = arith.constant 0 : index
    %c0_12 = arith.constant 0 : index
    %13 = vector.load %arg5[%c0_11, %c0_12] : memref<32x32xf32, #tpu.memory_space<vmem>>, vector<32x32xf32>
    %c0_13 = arith.constant 0 : index
    %c0_14 = arith.constant 0 : index
    %14 = vector.load %arg6[%c0_13, %c0_14] : memref<1x32xf32, #tpu.memory_space<vmem>>, vector<1x32xf32>
    %15 = vector.shape_cast %12 : vector<128x32xf32> to vector<4x32x32xf32>
    "tpu.trace_start"() <{level = 10 : i32, message = "gij,gjc->gic"}> : () -> ()
    %cst_15 = arith.constant dense<0.000000e+00> : vector<4x32x32xf32>
    %16 = tpu.matmul %0, %15, %cst_15 {dimension_numbers = #tpu.dot_dimension_numbers<[2], [1], [1], [2], [0, 0, 0, 1, 1, 2], [0], [0]>} : vector<4x32x32xf32>, vector<4x32x32xf32>, vector<4x32x32xf32> -> vector<4x32x32xf32>
    "tpu.trace_stop"() : () -> ()
    %17 = vector.shape_cast %16 : vector<4x32x32xf32> to vector<128x32xf32>
    %cst_16 = arith.constant dense<0.000000e+00> : vector<128x32xf32>
    %18 = tpu.matmul %17, %13, %cst_16 {dimension_numbers = #tpu.dot_dimension_numbers<[1], [0], [0], [1], [0, 0, 1, 1], [], []>} : vector<128x32xf32>, vector<32x32xf32>, vector<128x32xf32> -> vector<128x32xf32>
    %19 = vector.broadcast %14 : vector<1x32xf32> to vector<128x32xf32>
    %20 = arith.addf %18, %19 : vector<128x32xf32>
    %cst_17 = arith.constant 0.000000e+00 : f32
    %21 = vector.broadcast %cst_17 : f32 to vector<128x32xf32>
    %22 = arith.maximumf %20, %21 : vector<128x32xf32>
    %c0_18 = arith.constant 0 : index
    %c0_19 = arith.constant 0 : index
    %23 = vector.load %arg7[%c0_18, %c0_19] : memref<32x16xf32, #tpu.memory_space<vmem>>, vector<32x16xf32>
    %c0_20 = arith.constant 0 : index
    %c0_21 = arith.constant 0 : index
    %24 = vector.load %arg8[%c0_20, %c0_21] : memref<1x16xf32, #tpu.memory_space<vmem>>, vector<1x16xf32>
    %cst_22 = arith.constant dense<0.000000e+00> : vector<128x16xf32>
    %25 = tpu.matmul %22, %23, %cst_22 {dimension_numbers = #tpu.dot_dimension_numbers<[1], [0], [0], [1], [0, 0, 1, 1], [], []>} : vector<128x32xf32>, vector<32x16xf32>, vector<128x16xf32> -> vector<128x16xf32>
    %26 = vector.shape_cast %25 : vector<128x16xf32> to vector<4x32x16xf32>
    "tpu.trace_start"() <{level = 10 : i32, message = "gij,gjc->gic"}> : () -> ()
    %cst_23 = arith.constant dense<0.000000e+00> : vector<4x32x16xf32>
    %27 = tpu.matmul %0, %26, %cst_23 {dimension_numbers = #tpu.dot_dimension_numbers<[2], [1], [1], [2], [0, 0, 0, 1, 1, 2], [0], [0]>} : vector<4x32x32xf32>, vector<4x32x16xf32>, vector<4x32x16xf32> -> vector<4x32x16xf32>
    "tpu.trace_stop"() : () -> ()
    %28 = vector.shape_cast %27 : vector<4x32x16xf32> to vector<128x16xf32>
    %29 = vector.broadcast %24 : vector<1x16xf32> to vector<128x16xf32>
    %30 = arith.addf %28, %29 : vector<128x16xf32>
    %c0_24 = arith.constant 0 : index
    %c0_25 = arith.constant 0 : index
    %31 = vector.load %arg9[%c0_24, %c0_25] : memref<80x128xf32, #tpu.memory_space<vmem>>, vector<80x128xf32>
    %32 = vector.extract_strided_slice %31 {offsets = [0, 0], sizes = [32, 128], strides = [1, 1]} : vector<80x128xf32> to vector<32x128xf32>
    %cst_26 = arith.constant dense<0.000000e+00> : vector<128x128xf32>
    %33 = tpu.matmul %12, %32, %cst_26 {dimension_numbers = #tpu.dot_dimension_numbers<[1], [0], [0], [1], [0, 0, 1, 1], [], []>} : vector<128x32xf32>, vector<32x128xf32>, vector<128x128xf32> -> vector<128x128xf32>
    %34 = vector.extract_strided_slice %31 {offsets = [32, 0], sizes = [32, 128], strides = [1, 1]} : vector<80x128xf32> to vector<32x128xf32>
    %cst_27 = arith.constant dense<0.000000e+00> : vector<128x128xf32>
    %35 = tpu.matmul %22, %34, %cst_27 {dimension_numbers = #tpu.dot_dimension_numbers<[1], [0], [0], [1], [0, 0, 1, 1], [], []>} : vector<128x32xf32>, vector<32x128xf32>, vector<128x128xf32> -> vector<128x128xf32>
    %36 = arith.addf %33, %35 : vector<128x128xf32>
    %37 = vector.extract_strided_slice %31 {offsets = [64, 0], sizes = [16, 128], strides = [1, 1]} : vector<80x128xf32> to vector<16x128xf32>
    %cst_28 = arith.constant dense<0.000000e+00> : vector<128x128xf32>
    %38 = tpu.matmul %30, %37, %cst_28 {dimension_numbers = #tpu.dot_dimension_numbers<[1], [0], [0], [1], [0, 0, 1, 1], [], []>} : vector<128x16xf32>, vector<16x128xf32>, vector<128x128xf32> -> vector<128x128xf32>
    %39 = arith.addf %36, %38 : vector<128x128xf32>
    %c0_29 = arith.constant 0 : index
    %c0_30 = arith.constant 0 : index
    %40 = vector.load %arg10[%c0_29, %c0_30] : memref<1x128xf32, #tpu.memory_space<vmem>>, vector<1x128xf32>
    %41 = vector.broadcast %40 : vector<1x128xf32> to vector<128x128xf32>
    %42 = arith.addf %39, %41 : vector<128x128xf32>
    %cst_31 = arith.constant dense<0xFF800000> : vector<128xf32>
    %43 = vector.multi_reduction <maximumf>, %42, %cst_31 [1] : vector<128x128xf32> to vector<128xf32>
    %44 = vector.shape_cast %43 : vector<128xf32> to vector<128x1xf32>
    %45 = vector.broadcast %44 : vector<128x1xf32> to vector<128x128xf32>
    %46 = arith.subf %42, %45 : vector<128x128xf32>
    %47 = math.exp %46 : vector<128x128xf32>
    %cst_32 = arith.constant dense<0.000000e+00> : vector<128xf32>
    %48 = vector.multi_reduction <add>, %47, %cst_32 [1] : vector<128x128xf32> to vector<128xf32>
    %49 = vector.shape_cast %48 : vector<128xf32> to vector<128x1xf32>
    %50 = math.log %49 : vector<128x1xf32>
    %51 = vector.broadcast %50 : vector<128x1xf32> to vector<128x128xf32>
    %52 = arith.subf %46, %51 : vector<128x128xf32>
    %53 = vector.shape_cast %52 : vector<128x128xf32> to vector<4x32x128xf32>
    %c0_33 = arith.constant 0 : index
    %c0_34 = arith.constant 0 : index
    %c0_35 = arith.constant 0 : index
    %54 = vector.load %arg11[%c0_33, %c0_34, %c0_35] : memref<4x32x128xf32, #tpu.memory_space<vmem>>, vector<4x32x128xf32>
    tpu.vector_store %arg11[%c0_33, %c0_34, %c0_35], %53 {strides = array<i32>} : memref<4x32x128xf32, #tpu.memory_space<vmem>>, vector<4x32x128xf32>,
    return
  }
  func.func @transform_0(%arg0: i32) -> (i32, i32, i32) {
    %c0_i32 = arith.constant 0 : i32
    %c0_i32_0 = arith.constant 0 : i32
    %c0_i32_1 = arith.constant 0 : i32
    return %arg0, %c0_i32, %c0_i32_0 : i32, i32, i32
  }
  func.func @transform_1(%arg0: i32) -> (i32, i32, i32) {
    %c0_i32 = arith.constant 0 : i32
    %c0_i32_0 = arith.constant 0 : i32
    %c0_i32_1 = arith.constant 0 : i32
    return %arg0, %c0_i32, %c0_i32_0 : i32, i32, i32
  }
  func.func @transform_2(%arg0: i32) -> (i32, i32) {
    %c0_i32 = arith.constant 0 : i32
    %c0_i32_0 = arith.constant 0 : i32
    %c0_i32_1 = arith.constant 0 : i32
    return %c0_i32, %c0_i32_0 : i32, i32
  }
  func.func @transform_3(%arg0: i32) -> (i32, i32) {
    %c0_i32 = arith.constant 0 : i32
    %c0_i32_0 = arith.constant 0 : i32
    %c0_i32_1 = arith.constant 0 : i32
    return %c0_i32, %c0_i32_0 : i32, i32
  }
  func.func @transform_4(%arg0: i32) -> (i32, i32) {
    %c0_i32 = arith.constant 0 : i32
    %c0_i32_0 = arith.constant 0 : i32
    %c0_i32_1 = arith.constant 0 : i32
    return %c0_i32, %c0_i32_0 : i32, i32
  }
  func.func @transform_5(%arg0: i32) -> (i32, i32) {
    %c0_i32 = arith.constant 0 : i32
    %c0_i32_0 = arith.constant 0 : i32
    %c0_i32_1 = arith.constant 0 : i32
    return %c0_i32, %c0_i32_0 : i32, i32
  }
  func.func @transform_6(%arg0: i32) -> (i32, i32) {
    %c0_i32 = arith.constant 0 : i32
    %c0_i32_0 = arith.constant 0 : i32
    %c0_i32_1 = arith.constant 0 : i32
    return %c0_i32, %c0_i32_0 : i32, i32
  }
  func.func @transform_7(%arg0: i32) -> (i32, i32) {
    %c0_i32 = arith.constant 0 : i32
    %c0_i32_0 = arith.constant 0 : i32
    %c0_i32_1 = arith.constant 0 : i32
    return %c0_i32, %c0_i32_0 : i32, i32
  }
  func.func @transform_8(%arg0: i32) -> (i32, i32) {
    %c0_i32 = arith.constant 0 : i32
    %c0_i32_0 = arith.constant 0 : i32
    %c0_i32_1 = arith.constant 0 : i32
    return %c0_i32, %c0_i32_0 : i32, i32
  }
  func.func @transform_9(%arg0: i32) -> (i32, i32) {
    %c0_i32 = arith.constant 0 : i32
    %c0_i32_0 = arith.constant 0 : i32
    %c0_i32_1 = arith.constant 0 : i32
    return %c0_i32, %c0_i32_0 : i32, i32
  }
  func.func @transform_10(%arg0: i32) -> (i32, i32, i32) {
    %c0_i32 = arith.constant 0 : i32
    %c0_i32_0 = arith.constant 0 : i32
    %c0_i32_1 = arith.constant 0 : i32
    return %arg0, %c0_i32, %c0_i32_0 : i32, i32, i32
  }
}

</mosaic_0001>

<bundles_post_ra>
// kernel: tpu_custom_call.1
= control target key start
LH: loop header
LB: loop body
LE: loop exit
PB: predicated region body
PF: predicated region fallthrough
CT: control target
= control target key end

     0   :  { %15 = vsyncpa [#allocation3], 0  ;;  %s4396_s0 = inlined_call_operand.vmem [shape: f32[4,32,16], index: 0, kind: input, shape index: {}]   ;;  %s4397_s1 = inlined_call_operand.vmem [shape: f32[4,32,32], index: 1, kind: input, shape index: {}]   ;;  %s4398_s2 = inlined_call_operand.hbm [shape: f32[16,32], index: 2, kind: input, shape index: {}]   ;;  %s4399_s3 = inlined_call_operand.vmem [shape: f32[1,32], index: 3, kind: input, shape index: {}]   ;;  %s4400_s4 = inlined_call_operand.vmem [shape: f32[32,32], index: 4, kind: input, shape index: {}]   ;;  %s4401_s5 = inlined_call_operand.vmem [shape: f32[1,32], index: 5, kind: input, shape index: {}]   ;;  %s4402_s6 = inlined_call_operand.vmem [shape: f32[32,16], index: 6, kind: input, shape index: {}]   ;;  %s4403_s7 = inlined_call_operand.vmem [shape: f32[1,16], index: 7, kind: input, shape index: {}]   ;;  %s4404_s8 = inlined_call_operand.vmem [shape: f32[80,128], index: 8, kind: input, shape index: {}]   ;;  %s4405_s9 = inlined_call_operand.vmem [shape: f32[1,128], index: 9, kind: input, shape index: {}]   ;;  %s4406_s10 = inlined_call_operand.hbm [shape: f32[4,32,128], index: 10, kind: output, shape index: {}]  }
   0x1   :  { %16 = vsyncpa [#allocation4], 0  ;;  %s3583_s13 = smov [#allocation2]   ;;  %s3535_s17 = scalar_lea.hbm %s4398_s2, 256 }
   0x2   :  { %s26_s14 = sshll.u32 %s3583_s13, 4  ;;  %p3536_p0 = scmp.ne.s32.totalorder %s4398_s2, %s3535_s17  ;;  %s27_s14 = int_to_ptr.vmem [resolvable:$true] %s26_s14 }
   0x3   :  { %p3539_p1 = scmp.lt.u32.totalorder %s3535_s17, %s4398_s2 }
   0x5   :  { %p3541_p2 = pnand %p3539_p1, %p3536_p0 }
   0x7   :  { %3544 = shalt.err (!%p3541_p2)
}
   0x8   :  { %s3545_s22 = scalar_lea.vmem %s27_s14, 256  ;;  %p3550_p4 = scmp.lt.s32.totalorder %s27_s14, %s27_s14 }
   0x9   :  { %p3546_p3 = scmp.ne.s32.totalorder %s27_s14, %s3545_s22  ;;  %p3551_p5 = scmp.lt.s32.totalorder %s3545_s22, %s3545_s22 }
   0xb   :  { %p3552_p6 = por %p3551_p5, %p3550_p4 }
   0xd   :  { %p3553_p7 = pnand %p3552_p6, %p3546_p3 }
   0xf   :  { %3556 = shalt.err (!%p3553_p7)
}
  0x10   :  { %s3584_s23 = smov 128   ;;  %s3585_s24 = smov 8  }
  0x11   :  { %32 = dma.hbm_to_vmem [thread:$0]  %s4398_s2, 256, %s27_s14, [#allocation3], %s3584_s23, %s3584_s23, %s3585_s24  }
  0x12   :  { %3579 = dma.done.wait [#allocation3], 256  }
  0x13   :  { %3580 = vsyncadd [#allocation3], 4294967040  ;;  %vm85_vm0 = vcmask 261120   ;;  %v66_v0 = vld [vmem:[%s4396_s0] sm:$0xff]  ;;  %v67_v1 = vld [vmem:[%s4396_s0 + $0x8] sm:$0xff]  ;;  %vm480_vm1 = vcmask 130048  }
  0x14   :  { %v68_v2 = vld [vmem:[%s4396_s0 + $0x10] sm:$0xff]  ;;  %v3295_v3 = vpack.c.bf16 %v67_v1, %v66_v0  ;;  %v69_v4 = vld [vmem:[%s4396_s0 + $0x18] sm:$0xff]  ;;  %v3672_v5 = vld [vmem:[%s4397_s1] sm:$0xff] }
  0x15   :  { %v3299_v6 = vpack.c.bf16 %v69_v4, %v68_v2  ;;  %2951 = vmatprep.mubr.msk.f32.mxu0 %vm85_vm0, %v3672_v5  ;;  %v70_v7 = vld [vmem:[%s4396_s0 + $0x20] sm:$0xff]  ;;  %v71_v8 = vld [vmem:[%s4396_s0 + $0x28] sm:$0xff]  ;;  %v72_v10 = vld [vmem:[%s4396_s0 + $0x30] sm:$0xff] }
  0x16   :  { %3296 = vmatprep.subr.bf16.mxu0 %v3295_v3  ;;  %v3303_v9 = vpack.c.bf16 %v71_v8, %v70_v7  ;;  %v73_v11 = vld [vmem:[%s4396_s0 + $0x38] sm:$0xff]  ;;  %v3691_v13 = vld [vmem:[%s4397_s1 + $0x20] sm:$0xff]  ;;  %v75_v15 = vld [vmem:[%s4396_s0 + $0x48] sm:$0xff] }
  0x17   :  { %3298 = vmatpush3.bf16.msra.mxu0 %v3295_v3  ;;  %v3307_v12 = vpack.c.bf16 %v73_v11, %v72_v10  ;;  %v74_v14 = vld [vmem:[%s4396_s0 + $0x40] sm:$0xff]  ;;  %2965 = vmatprep.mubr.msk.f32.mxu1 %vm85_vm0, %v3691_v13  ;;  %v76_v17 = vld [vmem:[%s4396_s0 + $0x50] sm:$0xff]  ;;  %v77_v18 = vld [vmem:[%s4396_s0 + $0x58] sm:$0xff] }
  0x18   :  { %3300 = vmatprep.subr.bf16.mxu0 %v3299_v6  ;;  %3304 = vmatprep.subr.bf16.mxu1 %v3303_v9  ;;  %v3311_v16 = vpack.c.bf16 %v75_v15, %v74_v14  ;;  %v78_v19 = vld [vmem:[%s4396_s0 + $0x60] sm:$0xff]  ;;  %v79_v20 = vld [vmem:[%s4396_s0 + $0x68] sm:$0xff]  ;;  %v80_v23 = vld [vmem:[%s4396_s0 + $0x70] sm:$0xff]  ;;  %v3315_v25 = vpack.c.bf16 %v77_v18, %v76_v17 }
  0x19   :  { %3306 = vmatpush3.bf16.msra.mxu1 %v3303_v9  ;;  %v3716_v21 = vld [vmem:[%s4397_s1 + $0x8] sm:$0xff]  ;;  %v3319_v22 = vpack.c.bf16 %v79_v20, %v78_v19  ;;  %v3724_v24 = vld [vmem:[%s4397_s1 + $0x10] sm:$0xff]  ;;  %v81_v26 = vld [vmem:[%s4396_s0 + $0x78] sm:$0xff] }
  0x1a   :  { %3308 = vmatprep.subr.bf16.mxu1 %v3307_v12  ;;  %v3732_v27 = vld [vmem:[%s4397_s1 + $0x28] sm:$0xff]  ;;  %v3739_v28 = vld [vmem:[%s4397_s1 + $0x30] sm:$0xff]  ;;  %v3323_v29 = vpack.c.bf16 %v81_v26, %v80_v23  ;;  %v3746_v30 = vld [vmem:[%s4397_s1 + $0x18] sm:$0xff] }
  0x1b   :  { %3302 = vmatpush3.bf16.msra.mxu0 %v3299_v6  ;;  %v82_v31 = vld [vmem:[#allocation2] sm:$0xff]  ;;  %v83_v32 = vld [vmem:[#allocation2 + $0x8] sm:$0xff]  ;;  %v3760_v34 = vld [vmem:[%s4397_s1 + $0x38] sm:$0xff] }
  0x1c   :  { %3312 = vmatprep.subr.bf16.mxu0 %v3311_v16  ;;  %v3753_v33 = vld [vmem:[%s4397_s1 + $0x40] sm:$0xff]  ;;  %v3327_v36 = vpack.c.bf16 %v83_v32, %v82_v31  ;;  %v3774_v37 = vld [vmem:[%s4397_s1 + $0x48] sm:$0xff]  ;;  %v3781_v38 = vld [vmem:[%s4397_s1 + $0x50] sm:$0xff] }
  0x1d   :  { %3310 = vmatpush3.bf16.msra.mxu1 %v3307_v12  ;;  %v3767_v35 = vld [vmem:[%s4397_s1 + $0x60] sm:$0xff]  ;;  %v3788_v39 = vld [vmem:[%s4397_s1 + $0x68] sm:$0xff]  ;;  %v3795_v40 = vld [vmem:[%s4397_s1 + $0x70] sm:$0xff] }
  0x1e   :  { %2952 = vmatmul.mubr.msk.f32.vlgmr.msra.gmra.mrb[0].mxu0 %vm85_vm0, %v3716_v21  ;;  %3320 = vmatprep.subr.bf16.mxu1 %v3319_v22  ;;  %v3802_v41 = vld [vmem:[%s4397_s1 + $0x58] sm:$0xff]  ;;  %v690_v59 = vld [vmem:[%s4400_s4] sm:$0xff]  ;;  %v691_v60 = vld [vmem:[%s4400_s4 + $0x8] sm:$0xff] }
  0x1f   :  { %2954 = vmatprep.mubr.msk.f32.mxu0 %vm85_vm0, %v3724_v24  ;;  %3314 = vmatpush3.bf16.msra.mxu0 %v3311_v16  ;;  %v3811_v42 = vld [vmem:[%s4397_s1 + $0x78] sm:$0xff]  ;;  %v692_v61 = vld [vmem:[%s4400_s4 + $0x10] sm:$0xff]  ;;  %v3844_v62 = vpack.c.bf16 %v691_v60, %v690_v59  ;;  %v3858_v1 = vld [vmem:[%s4399_s3] ss:$0 sm:$0xff] }
  0x20   :  { %2966 = vmatmul.mubr.msk.f32.vlgmr.msra.gmra.mrb[0].mxu1 %vm85_vm0, %v3732_v27  ;;  %3316 = vmatprep.subr.bf16.mxu0 %v3315_v25  ;;  %v693_v63 = vld [vmem:[%s4400_s4 + $0x18] sm:$0xff] }
  0x21   :  { %2968 = vmatprep.mubr.msk.f32.mxu1 %vm85_vm0, %v3739_v28  ;;  %3322 = vmatpush3.bf16.msra.mxu1 %v3319_v22  ;;  %v3849_v0 = vpack.c.bf16 %v693_v63, %v692_v61 }
  0x22   :  { %2955 = vmatmul.mubr.msk.f32.gmra.mrb[2].mxu0 %vm85_vm0, %v3746_v30  ;;  %3324 = vmatprep.subr.bf16.mxu1 %v3323_v29 }
  0x23   :  { %3318 = vmatpush3.bf16.msra.mxu0 %v3315_v25  ;;  %2979 = vmatprep.mubr.msk.f32.mxu0 %vm85_vm0, %v3753_v33 }
  0x24   :  { %2969 = vmatmul.mubr.msk.f32.gmra.mrb[2].mxu1 %vm85_vm0, %v3760_v34  ;;  %3364 = vmatprep.subr.bf16.mxu0 %v3844_v62 }
  0x25   :  { %3326 = vmatpush3.bf16.msra.mxu1 %v3323_v29  ;;  %2993 = vmatprep.mubr.msk.f32.mxu1 %vm85_vm0, %v3767_v35 }
  0x26   :  { %2980 = vmatmul.mubr.msk.f32.vlgmr.msra.gmra.mrb[4].mxu0 %vm85_vm0, %v3774_v37  ;;  %3328 = vmatprep.subr.bf16.mxu1 %v3327_v36 }
  0x27   :  { %2982 = vmatprep.mubr.msk.f32.mxu0 %vm85_vm0, %v3781_v38  ;;  %3366 = vmatpush3.bf16.msra.mxu0 %v3844_v62 }
  0x28   :  { %2994 = vmatmul.mubr.msk.f32.vlgmr.msra.gmra.mrb[4].mxu1 %vm85_vm0, %v3788_v39  ;;  %3368 = vmatprep.subr.bf16.mxu0 %v3849_v0 }
  0x29   :  { %2996 = vmatprep.mubr.msk.f32.mxu1 %vm85_vm0, %v3795_v40  ;;  %3330 = vmatpush3.bf16.msra.mxu1 %v3327_v36 }
  0x2a   :  { %2983 = vmatmul.mubr.msk.f32.gmra.mrb[6].mxu0 %vm85_vm0, %v3802_v41 }
  0x2b   :  { %3370 = vmatpush3.bf16.msra.mxu0 %v3849_v0 }
  0x2c   :  { %2997 = vmatmul.mubr.msk.f32.gmra.mrb[6].mxu1 %vm85_vm0, %v3811_v42 }
  0xf1   :  { %v2953_v43 = vpop.f32.mrb[0].mxu0 }
  0xf2   :  { %v164_v44 = vpop.f32.mrb[1].mxu0 }
  0xf3   :  { %3003 = vmatprep.mubr.msk.f32.mxu1 %vm480_vm1, %v164_v44  ;;  %v2967_v45 = vpop.f32.mrb[0].mxu1 }
  0xf4   :  { %3004 = vmatmul.mubr.msk.f32.vlgmr.msra.gmra.mrb[8].mxu1 %vm480_vm1, %v2953_v43  ;;  %v261_v46 = vpop.f32.mrb[1].mxu1 }
  0xf5   :  { %v2956_v47 = vpop.f32.mrb[2].mxu0 }
  0xf6   :  { %v174_v48 = vpop.f32.mrb[3].mxu0 }
  0xf7   :  { %3006 = vmatprep.mubr.msk.f32.mxu1 %vm480_vm1, %v174_v48  ;;  %v2970_v49 = vpop.f32.mrb[2].mxu1 }
  0xf8   :  { %3007 = vmatmul.mubr.msk.f32.gmra.mrb[10].mxu1 %vm480_vm1, %v2956_v47  ;;  %v271_v50 = vpop.f32.mrb[3].mxu1 }
  0xf9   :  { %3009 = vmatprep.mubr.msk.f32.mxu1 %vm480_vm1, %v261_v46  ;;  %v2981_v51 = vpop.f32.mrb[4].mxu0 }
  0xfa   :  { %v358_v52 = vpop.f32.mrb[5].mxu0 }
  0xfb   :  { %v2995_v53 = vpop.f32.mrb[4].mxu1 }
  0xfc   :  { %3010 = vmatmul.mubr.msk.f32.gmra.mrb[12].mxu1 %vm480_vm1, %v2967_v45  ;;  %v455_v54 = vpop.f32.mrb[5].mxu1 }
  0xfd   :  { %3012 = vmatprep.mubr.msk.f32.mxu1 %vm480_vm1, %v271_v50  ;;  %v2984_v55 = vpop.f32.mrb[6].mxu0 }
  0xfe   :  { %v368_v56 = vpop.f32.mrb[7].mxu0 }
  0xff   :  { %v2998_v57 = vpop.f32.mrb[6].mxu1 }
 0x100   :  { %3013 = vmatmul.mubr.msk.f32.gmra.mrb[14].mxu1 %vm480_vm1, %v2970_v49  ;;  %v465_v58 = vpop.f32.mrb[7].mxu1 }
 0x101   :  { %3015 = vmatprep.mubr.msk.f32.mxu1 %vm480_vm1, %v358_v52 }
 0x104   :  { %3016 = vmatmul.mubr.msk.f32.gmra.mrb[16].mxu1 %vm480_vm1, %v2981_v51 }
 0x105   :  { %3018 = vmatprep.mubr.msk.f32.mxu1 %vm480_vm1, %v368_v56 }
 0x108   :  { %3019 = vmatmul.mubr.msk.f32.gmra.mrb[18].mxu1 %vm480_vm1, %v2984_v55 }
 0x109   :  { %3021 = vmatprep.mubr.msk.f32.mxu1 %vm480_vm1, %v455_v54 }
 0x10c   :  { %3022 = vmatmul.mubr.msk.f32.gmra.mrb[20].mxu1 %vm480_vm1, %v2995_v53 }
 0x10d   :  { %3024 = vmatprep.mubr.msk.f32.mxu1 %vm480_vm1, %v465_v58 }
 0x110   :  { %3025 = vmatmul.mubr.msk.f32.gmra.mrb[22].mxu1 %vm480_vm1, %v2998_v57 }
 0x111   :  { %3035 = vmatprep.mubr.msk.f32.mxu1 %vm85_vm0, %v3672_v5 }
 0x1c7   :  { %v3005_v2 = vpop.f32.mrb[8].mxu1 }
 0x1c8   :  { %v3861_v3 = vadd.f32 %v3005_v2, %v3858_v1  ;;  %v595_v4 = vpop.f32.mrb[9].mxu1 }
 0x1c9   :  { %v3864_v6 = vadd.f32 %v3858_v1, %v595_v4 }
 0x1ca   :  { %v4421_v7 = vmax.f32 %v3861_v3, 0.0 }
 0x1cb   :  { %v4422_v8 = vmax.f32 %v3864_v6, 0.0  ;;  %v3008_v9 = vpop.f32.mrb[10].mxu1 }
 0x1cc   :  { %v3869_v10 = vadd.f32 %v3008_v9, %v3858_v1  ;;  %v605_v11 = vpop.f32.mrb[11].mxu1 }
 0x1cd   :  { %v3331_v12 = vpack.c.bf16 %v4421_v7, %v4422_v8  ;;  %v3876_v14 = vadd.f32 %v3858_v1, %v605_v11 }
 0x1ce   :  { %v4419_v15 = vmax.f32 %v3869_v10, 0.0 }
 0x1cf   :  { %v4420_v16 = vmax.f32 %v3876_v14, 0.0  ;;  %v3011_v17 = vpop.f32.mrb[12].mxu1  ;;  %3332 = vmatprep.subr.bf16.mxu1 %v3331_v12 }
 0x1d0   :  { %v3881_v18 = vadd.f32 %v3011_v17, %v3858_v1  ;;  %v615_v19 = vpop.f32.mrb[13].mxu1  ;;  %3334 = vmatpush3.bf16.msra.mxu1 %v3331_v12 }
 0x1d1   :  { %v3335_v20 = vpack.c.bf16 %v4419_v15, %v4420_v16  ;;  %v3888_v22 = vadd.f32 %v3858_v1, %v615_v19 }
 0x1d2   :  { %v4417_v23 = vmax.f32 %v3881_v18, 0.0 }
 0x1d3   :  { %v4418_v25 = vmax.f32 %v3888_v22, 0.0  ;;  %v3014_v26 = vpop.f32.mrb[14].mxu1  ;;  %3336 = vmatprep.subr.bf16.mxu1 %v3335_v20 }
 0x1d4   :  { %v3893_v29 = vadd.f32 %v3014_v26, %v3858_v1  ;;  %v625_v31 = vpop.f32.mrb[15].mxu1  ;;  %3338 = vmatpush3.bf16.msra.mxu1 %v3335_v20 }
 0x1d5   :  { %v3339_v32 = vpack.c.bf16 %v4417_v23, %v4418_v25  ;;  %v3900_v36 = vadd.f32 %v3858_v1, %v625_v31 }
 0x1d6   :  { %v4415_v43 = vmax.f32 %v3893_v29, 0.0 }
 0x1d7   :  { %v4416_v44 = vmax.f32 %v3900_v36, 0.0  ;;  %v3017_v45 = vpop.f32.mrb[16].mxu1  ;;  %3036 = vmatmul.mubr.msk.f32.vlgmr.msra.gmra.mrb[24].mxu1 %vm85_vm0, %v3716_v21  ;;  %3340 = vmatprep.subr.bf16.mxu1 %v3339_v32 }
 0x1d8   :  { %v3907_v46 = vadd.f32 %v3017_v45, %v3858_v1  ;;  %v635_v47 = vpop.f32.mrb[17].mxu1  ;;  %3342 = vmatpush3.bf16.msra.mxu1 %v3339_v32  ;;  %3038 = vmatprep.mubr.msk.f32.mxu1 %vm85_vm0, %v3724_v24  ;;  %v1251_v45 = vld [vmem:[%s4402_s6 + $0x8] sm:$0xff] }
 0x1d9   :  { %v3343_v48 = vpack.c.bf16 %v4415_v43, %v4416_v44  ;;  %v3916_v49 = vadd.f32 %v3858_v1, %v635_v47 }
 0x1da   :  { %v4413_v50 = vmax.f32 %v3907_v46, 0.0 }
 0x1db   :  { %v4414_v51 = vmax.f32 %v3916_v49, 0.0  ;;  %v3020_v52 = vpop.f32.mrb[18].mxu1  ;;  %3039 = vmatmul.mubr.msk.f32.gmra.mrb[26].mxu1 %vm85_vm0, %v3746_v30  ;;  %3344 = vmatprep.subr.bf16.mxu1 %v3343_v48 }
 0x1dc   :  { %v3923_v53 = vadd.f32 %v3020_v52, %v3858_v1  ;;  %v645_v54 = vpop.f32.mrb[19].mxu1  ;;  %3346 = vmatpush3.bf16.msra.mxu1 %v3343_v48  ;;  %3049 = vmatprep.mubr.msk.f32.mxu1 %vm85_vm0, %v3691_v13 }
 0x1dd   :  { %v3347_v55 = vpack.c.bf16 %v4413_v50, %v4414_v51  ;;  %v3932_v56 = vadd.f32 %v3858_v1, %v645_v54 }
 0x1de   :  { %v4411_v57 = vmax.f32 %v3923_v53, 0.0 }
 0x1df   :  { %v4412_v58 = vmax.f32 %v3932_v56, 0.0  ;;  %v3023_v59 = vpop.f32.mrb[20].mxu1  ;;  %3050 = vmatmul.mubr.msk.f32.vlgmr.msra.gmra.mrb[28].mxu1 %vm85_vm0, %v3732_v27  ;;  %3348 = vmatprep.subr.bf16.mxu1 %v3347_v55 }
 0x1e0   :  { %v3939_v60 = vadd.f32 %v3023_v59, %v3858_v1  ;;  %v655_v61 = vpop.f32.mrb[21].mxu1  ;;  %3350 = vmatpush3.bf16.msra.mxu1 %v3347_v55  ;;  %3052 = vmatprep.mubr.msk.f32.mxu1 %vm85_vm0, %v3739_v28 }
 0x1e1   :  { %v3351_v63 = vpack.c.bf16 %v4411_v57, %v4412_v58  ;;  %v3948_v2 = vadd.f32 %v3858_v1, %v655_v61 }
 0x1e2   :  { %v4409_v4 = vmax.f32 %v3939_v60, 0.0 }
 0x1e3   :  { %v4410_v9 = vmax.f32 %v3948_v2, 0.0  ;;  %v3026_v11 = vpop.f32.mrb[22].mxu1  ;;  %3053 = vmatmul.mubr.msk.f32.gmra.mrb[30].mxu1 %vm85_vm0, %v3760_v34  ;;  %3352 = vmatprep.subr.bf16.mxu1 %v3351_v63 }
 0x1e4   :  { %v3955_v12 = vadd.f32 %v3026_v11, %v3858_v1  ;;  %v665_v17 = vpop.f32.mrb[23].mxu1  ;;  %3354 = vmatpush3.bf16.msra.mxu1 %v3351_v63  ;;  %3063 = vmatprep.mubr.msk.f32.mxu1 %vm85_vm0, %v3753_v33 }
 0x1e5   :  { %v3355_v19 = vpack.c.bf16 %v4409_v4, %v4410_v9  ;;  %v3964_v20 = vadd.f32 %v3858_v1, %v665_v17  ;;  %v1250_v1 = vld [vmem:[%s4402_s6] sm:$0xff] }
 0x1e6   :  { %v4407_v26 = vmax.f32 %v3955_v12, 0.0  ;;  %v3371_v47 = vpack.c.bf16 %v1251_v45, %v1250_v1 }
 0x1e7   :  { %v4408_v31 = vmax.f32 %v3964_v20, 0.0  ;;  %3064 = vmatmul.mubr.msk.f32.vlgmr.msra.gmra.mrb[32].mxu1 %vm85_vm0, %v3774_v37  ;;  %3356 = vmatprep.subr.bf16.mxu1 %v3355_v19 }
 0x1e8   :  { %3358 = vmatpush3.bf16.msra.mxu1 %v3355_v19  ;;  %3066 = vmatprep.mubr.msk.f32.mxu1 %vm85_vm0, %v3781_v38 }
 0x1e9   :  { %v3359_v32 = vpack.c.bf16 %v4407_v26, %v4408_v31 }
 0x1eb   :  { %3067 = vmatmul.mubr.msk.f32.gmra.mrb[34].mxu1 %vm85_vm0, %v3802_v41  ;;  %3360 = vmatprep.subr.bf16.mxu1 %v3359_v32 }
 0x1ec   :  { %3362 = vmatpush3.bf16.msra.mxu1 %v3359_v32  ;;  %3077 = vmatprep.mubr.msk.f32.mxu1 %vm85_vm0, %v3767_v35 }
 0x1ed   :  { %3431 = vmatprep.subr.bf16.mxu1 %v3844_v62 }
 0x1ef   :  { %3078 = vmatmul.mubr.msk.f32.vlgmr.msra.gmra.mrb[36].mxu1 %vm85_vm0, %v3788_v39 }
 0x1f0   :  { %3080 = vmatprep.mubr.msk.f32.mxu1 %vm85_vm0, %v3795_v40  ;;  %3433 = vmatpush3.bf16.msra.mxu1 %v3844_v62 }
 0x1f1   :  { %3432 = vmatprep.subr.bf16.mxu1 %v3849_v0 }
 0x1f3   :  { %3081 = vmatmul.mubr.msk.f32.gmra.mrb[38].mxu1 %vm85_vm0, %v3811_v42 }
 0x1f4   :  { %3434 = vmatpush3.bf16.msra.mxu1 %v3849_v0 }
 0x1f5   :  { %3372 = vmatprep.subr.bf16.mxu1 %v3371_v47 }
 0x2aa   :  { %v3037_v48 = vpop.f32.mrb[24].mxu1 }
 0x2ab   :  { %v761_v52 = vpop.f32.mrb[25].mxu1 }
 0x2ac   :  { %3091 = vmatprep.mubr.msk.f32.mxu0 %vm85_vm0, %v761_v52 }
 0x2ad   :  { %3092 = vmatmul.mubr.msk.f32.vlgmr.msra.gmra.mrb[8].mxu0 %vm85_vm0, %v3037_v48  ;;  %v1253_v48 = vld [vmem:[%s4402_s6 + $0x18] sm:$0xff] }
 0x2ae   :  { %v3040_v62 = vpop.f32.mrb[26].mxu1 }
 0x2af   :  { %v771_v54 = vpop.f32.mrb[27].mxu1 }
 0x2b0   :  { %3094 = vmatprep.mubr.msk.f32.mxu0 %vm85_vm0, %v771_v54 }
 0x2b1   :  { %3095 = vmatmul.mubr.msk.f32.gmra.mrb[10].mxu0 %vm85_vm0, %v3040_v62  ;;  %v2632_v62 = vld [vmem:[%s4401_s5] ss:$0 sm:$0xff] }
 0x2b2   :  { %v3051_v0 = vpop.f32.mrb[28].mxu1 }
 0x2b3   :  { %v846_v55 = vpop.f32.mrb[29].mxu1 }
 0x2b4   :  { %3097 = vmatprep.mubr.msk.f32.mxu0 %vm85_vm0, %v846_v55 }
 0x2b5   :  { %3098 = vmatmul.mubr.msk.f32.gmra.mrb[12].mxu0 %vm85_vm0, %v3051_v0 }
 0x2b6   :  { %v3054_v59 = vpop.f32.mrb[30].mxu1 }
 0x2b7   :  { %v856_v61 = vpop.f32.mrb[31].mxu1 }
 0x2b8   :  { %3100 = vmatprep.mubr.msk.f32.mxu0 %vm85_vm0, %v856_v61 }
 0x2b9   :  { %3101 = vmatmul.mubr.msk.f32.gmra.mrb[14].mxu0 %vm85_vm0, %v3054_v59 }
 0x2ba   :  { %v3065_v63 = vpop.f32.mrb[32].mxu1  ;;  %3155 = vmatprep.mubr.msk.f32.mxu0 %vm85_vm0, %v3672_v5 }
 0x2bb   :  { %v931_v11 = vpop.f32.mrb[33].mxu1 }
 0x2bc   :  { %3103 = vmatprep.mubr.msk.f32.mxu1 %vm85_vm0, %v931_v11 }
 0x2bd   :  { %3104 = vmatmul.mubr.msk.f32.vlgmr.msra.gmra.mrb[40].mxu1 %vm85_vm0, %v3065_v63 }
 0x2be   :  { %v3068_v17 = vpop.f32.mrb[34].mxu1  ;;  %3374 = vmatpush3.bf16.msra.mxu1 %v3371_v47  ;;  %v1252_v47 = vld [vmem:[%s4402_s6 + $0x10] sm:$0xff] }
 0x2bf   :  { %v941_v19 = vpop.f32.mrb[35].mxu1  ;;  %v3375_v52 = vpack.c.bf16 %v1253_v48, %v1252_v47 }
 0x2c0   :  { %3106 = vmatprep.mubr.msk.f32.mxu1 %vm85_vm0, %v941_v19 }
 0x2c1   :  { %3107 = vmatmul.mubr.msk.f32.gmra.mrb[42].mxu1 %vm85_vm0, %v3068_v17  ;;  %3376 = vmatprep.subr.bf16.mxu1 %v3375_v52 }
 0x2c2   :  { %v3079_v32 = vpop.f32.mrb[36].mxu1  ;;  %3378 = vmatpush3.bf16.msra.mxu1 %v3375_v52 }
 0x2c3   :  { %v1016_v1 = vpop.f32.mrb[37].mxu1 }
 0x2c4   :  { %3109 = vmatprep.mubr.msk.f32.mxu1 %vm85_vm0, %v1016_v1 }
 0x2c5   :  { %3110 = vmatmul.mubr.msk.f32.gmra.mrb[44].mxu1 %vm85_vm0, %v3079_v32 }
 0x2c6   :  { %v3082_v45 = vpop.f32.mrb[38].mxu1 }
 0x2c7   :  { %v1026_v5 = vpop.f32.mrb[39].mxu1 }
 0x2c8   :  { %3112 = vmatprep.mubr.msk.f32.mxu1 %vm85_vm0, %v1026_v5 }
 0x2c9   :  { %3113 = vmatmul.mubr.msk.f32.gmra.mrb[46].mxu1 %vm85_vm0, %v3082_v45 }
 0x380   :  { %v3093_v54 = vpop.f32.mrb[8].mxu0 }
 0x381   :  { %v4023_v0 = vadd.f32 %v3093_v54, %v2632_v62  ;;  %v1155_v55 = vpop.f32.mrb[9].mxu0 }
 0x382   :  { %v4025_v59 = vadd.f32 %v2632_v62, %v1155_v55 }
 0x383   :  { %v1235_v11 = vmax.f32 %v4023_v0, 0.0 }
 0x384   :  { %v1234_v61 = vmax.f32 %v4025_v59, 0.0  ;;  %v3096_v63 = vpop.f32.mrb[10].mxu0 }
 0x385   :  { %v4029_v17 = vadd.f32 %v3096_v63, %v2632_v62  ;;  %v1165_v19 = vpop.f32.mrb[11].mxu0 }
 0x386   :  { %v4031_v32 = vadd.f32 %v2632_v62, %v1165_v19  ;;  %3123 = vmatprep.mubr.msk.f32.mxu1 %vm85_vm0, %v1234_v61 }
 0x387   :  { %3124 = vmatmul.mubr.msk.f32.vlgmr.msra.gmra.mrb[48].mxu1 %vm85_vm0, %v1235_v11  ;;  %v1237_v5 = vmax.f32 %v4029_v17, 0.0  ;;  %v4446_v17 = vmax.f32 %v3869_v10, 0.0  ;;  %v4451_v10 = vmax.f32 %v3916_v49, 0.0  ;;  %v4456_v49 = vmax.f32 %v3939_v60, 0.0 }
 0x388   :  { %v1236_v1 = vmax.f32 %v4031_v32, 0.0  ;;  %v3099_v45 = vpop.f32.mrb[12].mxu0 }
 0x389   :  { %v4041_v47 = vadd.f32 %v3099_v45, %v2632_v62  ;;  %v1175_v48 = vpop.f32.mrb[13].mxu0 }
 0x38a   :  { %v4043_v52 = vadd.f32 %v2632_v62, %v1175_v48  ;;  %3126 = vmatprep.mubr.msk.f32.mxu1 %vm85_vm0, %v1236_v1 }
 0x38b   :  { %v1239_v54 = vmax.f32 %v4041_v47, 0.0  ;;  %3127 = vmatmul.mubr.msk.f32.gmra.mrb[50].mxu1 %vm85_vm0, %v1237_v5 }
 0x38c   :  { %v1238_v55 = vmax.f32 %v4043_v52, 0.0  ;;  %v3102_v63 = vpop.f32.mrb[14].mxu0 }
 0x38d   :  { %v4053_v19 = vadd.f32 %v3102_v63, %v2632_v62  ;;  %v1185_v45 = vpop.f32.mrb[15].mxu0 }
 0x38e   :  { %v4055_v26 = vadd.f32 %v2632_v62, %v1185_v45  ;;  %3129 = vmatprep.mubr.msk.f32.mxu1 %vm85_vm0, %v1238_v55 }
 0x38f   :  { %v4429_v48 = vmax.f32 %v4053_v19, 0.0  ;;  %3130 = vmatmul.mubr.msk.f32.gmra.mrb[52].mxu1 %vm85_vm0, %v1239_v54 }
 0x390   :  { %v4431_v31 = vmax.f32 %v4055_v26, 0.0  ;;  %v3105_v4 = vpop.f32.mrb[40].mxu1 }
 0x391   :  { %v4065_v9 = vadd.f32 %v3105_v4, %v2632_v62  ;;  %v1195_v63 = vpop.f32.mrb[41].mxu1 }
 0x392   :  { %v4067_v57 = vadd.f32 %v2632_v62, %v1195_v63  ;;  %3132 = vmatprep.mubr.msk.f32.mxu1 %vm85_vm0, %v4431_v31 }
 0x393   :  { %v4423_v45 = vmax.f32 %v4065_v9, 0.0  ;;  %3133 = vmatmul.mubr.msk.f32.gmra.mrb[54].mxu1 %vm85_vm0, %v4429_v48  ;;  %v4436_v59 = vmax.f32 %v4065_v9, 0.0 }
 0x394   :  { %v4428_v58 = vmax.f32 %v4067_v57, 0.0  ;;  %v3108_v50 = vpop.f32.mrb[42].mxu1  ;;  %v4435_v0 = vmax.f32 %v4067_v57, 0.0 }
 0x395   :  { %v4077_v51 = vadd.f32 %v3108_v50, %v2632_v62  ;;  %v1205_v4 = vpop.f32.mrb[43].mxu1 }
 0x396   :  { %v4079_v43 = vadd.f32 %v2632_v62, %v1205_v4  ;;  %3135 = vmatprep.mubr.msk.f32.mxu1 %vm85_vm0, %v4428_v58 }
 0x397   :  { %v4424_v63 = vmax.f32 %v4077_v51, 0.0  ;;  %3136 = vmatmul.mubr.msk.f32.gmra.mrb[56].mxu1 %vm85_vm0, %v4423_v45 }
 0x398   :  { %v4426_v44 = vmax.f32 %v4079_v43, 0.0  ;;  %v3111_v23 = vpop.f32.mrb[44].mxu1 }
 0x399   :  { %v4089_v25 = vadd.f32 %v3111_v23, %v2632_v62  ;;  %v1215_v50 = vpop.f32.mrb[45].mxu1 }
 0x39a   :  { %v4091_v15 = vadd.f32 %v2632_v62, %v1215_v50  ;;  %3138 = vmatprep.mubr.msk.f32.mxu1 %vm85_vm0, %v4426_v44 }
 0x39b   :  { %v4427_v4 = vmax.f32 %v4089_v25, 0.0  ;;  %3139 = vmatmul.mubr.msk.f32.gmra.mrb[58].mxu1 %vm85_vm0, %v4424_v63  ;;  %v4440_v57 = vmax.f32 %v4089_v25, 0.0  ;;  %v4445_v25 = vmax.f32 %v3876_v14, 0.0  ;;  %v4450_v14 = vmax.f32 %v3893_v29, 0.0 }
 0x39c   :  { %v4425_v16 = vmax.f32 %v4091_v15, 0.0  ;;  %v3114_v7 = vpop.f32.mrb[46].mxu1  ;;  %v4455_v29 = vmax.f32 %v3948_v2, 0.0 }
 0x39d   :  { %v4101_v8 = vadd.f32 %v3114_v7, %v2632_v62  ;;  %v1225_v23 = vpop.f32.mrb[47].mxu1 }
 0x39e   :  { %v4103_v45 = vadd.f32 %v2632_v62, %v1225_v23  ;;  %3141 = vmatprep.mubr.msk.f32.mxu1 %vm85_vm0, %v4425_v16 }
 0x39f   :  { %v4432_v50 = vmax.f32 %v4101_v8, 0.0  ;;  %3142 = vmatmul.mubr.msk.f32.gmra.mrb[60].mxu1 %vm85_vm0, %v4427_v4 }
 0x3a0   :  { %v4430_v63 = vmax.f32 %v4103_v45, 0.0  ;;  %v4441_v9 = vmax.f32 %v4103_v45, 0.0 }
 0x3a2   :  { %3144 = vmatprep.mubr.msk.f32.mxu1 %vm85_vm0, %v4430_v63 }
 0x3a3   :  { %3145 = vmatmul.mubr.msk.f32.gmra.mrb[62].mxu1 %vm85_vm0, %v4432_v50 }
 0x3a4   :  { %3169 = vmatprep.mubr.msk.f32.mxu1 %vm85_vm0, %v3691_v13 }
 0x45a   :  { %v3125_v7 = vpop.f32.mrb[48].mxu1 }
 0x45b   :  { %v1369_v62 = vpop.f32.mrb[49].mxu1 }
 0x45c   :  { %v3379_v23 = vpack.c.bf16 %v3125_v7, %v1369_v62  ;;  %v1810_v62 = vld [vmem:[%s4404_s8] sm:$0xff] }
 0x45e   :  { %v3128_v16 = vpop.f32.mrb[50].mxu1  ;;  %3380 = vmatprep.subr.bf16.mxu0 %v3379_v23 }
 0x45f   :  { %v1379_v44 = vpop.f32.mrb[51].mxu1  ;;  %3382 = vmatpush3.bf16.msra.mxu0 %v3379_v23  ;;  %v1811_v23 = vld [vmem:[%s4404_s8 + $0x8] sm:$0xff] }
 0x460   :  { %v3383_v4 = vpack.c.bf16 %v3128_v16, %v1379_v44 }
 0x462   :  { %v3131_v58 = vpop.f32.mrb[52].mxu1  ;;  %3384 = vmatprep.subr.bf16.mxu0 %v3383_v4 }
 0x463   :  { %v1389_v48 = vpop.f32.mrb[53].mxu1  ;;  %3386 = vmatpush3.bf16.msra.mxu0 %v3383_v4 }
 0x464   :  { %v3387_v63 = vpack.c.bf16 %v3131_v58, %v1389_v48  ;;  %v1816_v48 = vld [vmem:[%s4404_s8 + $0x30] sm:$0xff] }
 0x466   :  { %v3134_v31 = vpop.f32.mrb[54].mxu1  ;;  %3156 = vmatmul.mubr.msk.f32.vlgmr.msra.gmra.mrb[16].mxu0 %vm85_vm0, %v3716_v21  ;;  %3388 = vmatprep.subr.bf16.mxu1 %v3387_v63  ;;  %v1814_v21 = vld [vmem:[%s4404_s8 + $0x20] sm:$0xff] }
 0x467   :  { %v1399_v50 = vpop.f32.mrb[55].mxu1  ;;  %3390 = vmatpush3.bf16.msra.mxu1 %v3387_v63  ;;  %3158 = vmatprep.mubr.msk.f32.mxu0 %vm85_vm0, %v3724_v24  ;;  %v1815_v24 = vld [vmem:[%s4404_s8 + $0x28] sm:$0xff]  ;;  %v1817_v63 = vld [vmem:[%s4404_s8 + $0x38] sm:$0xff] }
 0x468   :  { %v3391_v13 = vpack.c.bf16 %v3134_v31, %v1399_v50  ;;  %v3411_v31 = vpack.c.bf16 %v1815_v24, %v1814_v21  ;;  %v3415_v50 = vpack.c.bf16 %v1817_v63, %v1816_v48 }
 0x46a   :  { %v3137_v7 = vpop.f32.mrb[56].mxu1  ;;  %3159 = vmatmul.mubr.msk.f32.gmra.mrb[18].mxu0 %vm85_vm0, %v3746_v30  ;;  %3392 = vmatprep.subr.bf16.mxu1 %v3391_v13 }
 0x46b   :  { %v1409_v16 = vpop.f32.mrb[57].mxu1  ;;  %3394 = vmatpush3.bf16.msra.mxu1 %v3391_v13  ;;  %3183 = vmatprep.mubr.msk.f32.mxu0 %vm85_vm0, %v3753_v33 }
 0x46c   :  { %v3395_v44 = vpack.c.bf16 %v3137_v7, %v1409_v16  ;;  %v3419_v7 = vpack.c.bf16 %v1811_v23, %v1810_v62  ;;  %v1812_v16 = vld [vmem:[%s4404_s8 + $0x10] sm:$0xff] }
 0x46e   :  { %v3140_v58 = vpop.f32.mrb[58].mxu1  ;;  %3170 = vmatmul.mubr.msk.f32.vlgmr.msra.gmra.mrb[64].mxu1 %vm85_vm0, %v3732_v27  ;;  %3396 = vmatprep.subr.bf16.mxu0 %v3395_v44 }
 0x46f   :  { %v1419_v30 = vpop.f32.mrb[59].mxu1  ;;  %3398 = vmatpush3.bf16.msra.mxu0 %v3395_v44  ;;  %3172 = vmatprep.mubr.msk.f32.mxu1 %vm85_vm0, %v3739_v28  ;;  %v1819_v44 = vld [vmem:[%s4404_s8 + $0x48] sm:$0xff] }
 0x470   :  { %v3399_v33 = vpack.c.bf16 %v3140_v58, %v1419_v30 }
 0x472   :  { %v3143_v4 = vpop.f32.mrb[60].mxu1  ;;  %3173 = vmatmul.mubr.msk.f32.gmra.mrb[66].mxu1 %vm85_vm0, %v3760_v34  ;;  %3400 = vmatprep.subr.bf16.mxu0 %v3399_v33 }
 0x473   :  { %v1429_v27 = vpop.f32.mrb[61].mxu1  ;;  %3402 = vmatpush3.bf16.msra.mxu0 %v3399_v33  ;;  %3197 = vmatprep.mubr.msk.f32.mxu1 %vm85_vm0, %v3767_v35 }
 0x474   :  { %v3403_v28 = vpack.c.bf16 %v3143_v4, %v1429_v27  ;;  %3412 = vmatprep.subr.bf16.mxu0 %v3411_v31 }
 0x476   :  { %v3146_v13 = vpop.f32.mrb[62].mxu1  ;;  %3184 = vmatmul.mubr.msk.f32.vlgmr.msra.gmra.mrb[20].mxu0 %vm85_vm0, %v3774_v37  ;;  %3404 = vmatprep.subr.bf16.mxu1 %v3403_v28  ;;  %v1813_v37 = vld [vmem:[%s4404_s8 + $0x18] sm:$0xff] }
 0x477   :  { %v1439_v34 = vpop.f32.mrb[63].mxu1  ;;  %3406 = vmatpush3.bf16.msra.mxu1 %v3403_v28  ;;  %3414 = vmatpush3.bf16.msra.mxu0 %v3411_v31 }
 0x478   :  { %v3407_v35 = vpack.c.bf16 %v3146_v13, %v1439_v34  ;;  %3186 = vmatprep.mubr.msk.f32.mxu0 %vm85_vm0, %v3781_v38  ;;  %3416 = vmatprep.subr.bf16.mxu0 %v3415_v50  ;;  %v3423_v38 = vpack.c.bf16 %v1813_v37, %v1812_v16  ;;  %v2730_v37 = vld [vmem:[%s4405_s9] ss:$0 sm:$0xff]  ;;  %s3586_s9 = smov [#allocation5]  }
 0x479   :  { %s2571_s27 = sshll.u32 %s3586_s9, 4  ;;  %s2572_s27 = int_to_ptr.vmem [resolvable:$true] %s2571_s27 }
 0x47a   :  { %3187 = vmatmul.mubr.msk.f32.gmra.mrb[22].mxu0 %vm85_vm0, %v3802_v41  ;;  %3408 = vmatprep.subr.bf16.mxu1 %v3407_v35  ;;  %v1818_v41 = vld [vmem:[%s4404_s8 + $0x40] sm:$0xff]  ;;  %s3557_s28 = scalar_lea.vmem %s2572_s27, 2048  ;;  %p3562_p9 = scmp.lt.s32.totalorder %s2572_s27, %s2572_s27 }
 0x47b   :  { %3410 = vmatpush3.bf16.msra.mxu1 %v3407_v35  ;;  %3418 = vmatpush3.bf16.msra.mxu0 %v3415_v50  ;;  %p3558_p8 = scmp.ne.s32.totalorder %s2572_s27, %s3557_s28  ;;  %p3563_p10 = scmp.lt.s32.totalorder %s3557_s28, %s3557_s28 }
 0x47c   :  { %3211 = vmatprep.mubr.msk.f32.mxu0 %vm85_vm0, %v1234_v61  ;;  %3420 = vmatprep.subr.bf16.mxu0 %v3419_v7  ;;  %v4437_v61 = vmax.f32 %v4079_v43, 0.0  ;;  %v4442_v43 = vmax.f32 %v4101_v8, 0.0  ;;  %v4447_v8 = vmax.f32 %v3888_v22, 0.0  ;;  %v4452_v22 = vmax.f32 %v3907_v46, 0.0 }
 0x47d   :  { %v4457_v46 = vmax.f32 %v3964_v20, 0.0  ;;  %p3564_p11 = por %p3563_p10, %p3562_p9 }
 0x47e   :  { %3198 = vmatmul.mubr.msk.f32.vlgmr.msra.gmra.mrb[68].mxu1 %vm85_vm0, %v3788_v39  ;;  %3212 = vmatmul.mubr.msk.f32.vlgmr.msra.gmra.mrb[24].mxu0 %vm85_vm0, %v1235_v11  ;;  %v3427_v39 = vpack.c.bf16 %v1819_v44, %v1818_v41  ;;  %v4439_v11 = vmax.f32 %v4091_v15, 0.0  ;;  %v4444_v15 = vmax.f32 %v3861_v3, 0.0  ;;  %v4449_v3 = vmax.f32 %v3900_v36, 0.0 }
 0x47f   :  { %3214 = vmatprep.mubr.msk.f32.mxu0 %vm85_vm0, %v1236_v1  ;;  %3200 = vmatprep.mubr.msk.f32.mxu1 %vm85_vm0, %v3795_v40  ;;  %v4433_v40 = vmax.f32 %v4055_v26, 0.0  ;;  %v4438_v26 = vmax.f32 %v4077_v51, 0.0  ;;  %v4443_v51 = vmax.f32 %v3864_v6, 0.0  ;;  %v4448_v6 = vmax.f32 %v3881_v18, 0.0  ;;  %p3565_p12 = pnand %p3564_p11, %p3558_p8 }
 0x480   :  { %3422 = vmatpush3.bf16.msra.mxu0 %v3419_v7  ;;  %v4453_v18 = vmax.f32 %v3932_v56, 0.0  ;;  %v4454_v36 = vmax.f32 %v3923_v53, 0.0  ;;  %v4458_v56 = vmax.f32 %v3955_v12, 0.0  ;;  %v2681_v53 = vld [vmem:[%s4403_s7] ss:$0 sm:$0xff] }
 0x481   :  { %3424 = vmatprep.subr.bf16.mxu0 %v3423_v38 }
 0x482   :  { %3201 = vmatmul.mubr.msk.f32.gmra.mrb[70].mxu1 %vm85_vm0, %v3811_v42  ;;  %3215 = vmatmul.mubr.msk.f32.gmra.mrb[26].mxu0 %vm85_vm0, %v1237_v5  ;;  %v4434_v42 = vmax.f32 %v4053_v19, 0.0 }
 0x483   :  { %3217 = vmatprep.mubr.msk.f32.mxu0 %vm85_vm0, %v1238_v55 }
 0x484   :  { %3426 = vmatpush3.bf16.msra.mxu0 %v3423_v38 }
 0x485   :  { %3428 = vmatprep.subr.bf16.mxu0 %v3427_v39 }
 0x486   :  { %3218 = vmatmul.mubr.msk.f32.gmra.mrb[28].mxu0 %vm85_vm0, %v1239_v54 }
 0x487   :  { %3220 = vmatprep.mubr.msk.f32.mxu0 %vm85_vm0, %v4433_v40 }
 0x48a   :  { %3221 = vmatmul.mubr.msk.f32.gmra.mrb[30].mxu0 %vm85_vm0, %v4434_v42 }
 0x48b   :  { %3223 = vmatprep.mubr.msk.f32.mxu0 %vm85_vm0, %v4435_v0 }
 0x48e   :  { %3224 = vmatmul.mubr.msk.f32.gmra.mrb[32].mxu0 %vm85_vm0, %v4436_v59 }
 0x48f   :  { %3226 = vmatprep.mubr.msk.f32.mxu0 %vm85_vm0, %v4437_v61 }
 0x492   :  { %3227 = vmatmul.mubr.msk.f32.gmra.mrb[34].mxu0 %vm85_vm0, %v4438_v26 }
 0x493   :  { %3229 = vmatprep.mubr.msk.f32.mxu0 %vm85_vm0, %v4439_v11 }
 0x496   :  { %3230 = vmatmul.mubr.msk.f32.gmra.mrb[36].mxu0 %vm85_vm0, %v4440_v57 }
 0x497   :  { %3232 = vmatprep.mubr.msk.f32.mxu0 %vm85_vm0, %v4441_v9 }
 0x49a   :  { %3233 = vmatmul.mubr.msk.f32.gmra.mrb[38].mxu0 %vm85_vm0, %v4442_v43 }
 0x49b   :  { %3243 = vmatprep.mubr.msk.f32.mxu0 %vm85_vm0, %v4443_v51 }
 0x49e   :  { %3244 = vmatmul.mubr.msk.f32.vlgmr.msra.gmra.mrb[24].mxu0 %vm85_vm0, %v4444_v15 }
 0x49f   :  { %3246 = vmatprep.mubr.msk.f32.mxu0 %vm85_vm0, %v4445_v25  ;;  %3430 = vmatpush3.bf16.msra.mxu0 %v3427_v39 }
 0x4a2   :  { %3247 = vmatmul.mubr.msk.f32.gmra.mrb[26].mxu0 %vm85_vm0, %v4446_v17 }
 0x4a3   :  { %3249 = vmatprep.mubr.msk.f32.mxu0 %vm85_vm0, %v4447_v8 }
 0x4a6   :  { %3250 = vmatmul.mubr.msk.f32.gmra.mrb[28].mxu0 %vm85_vm0, %v4448_v6 }
 0x4a7   :  { %3252 = vmatprep.mubr.msk.f32.mxu0 %vm85_vm0, %v4449_v3 }
 0x4aa   :  { %3253 = vmatmul.mubr.msk.f32.gmra.mrb[30].mxu0 %vm85_vm0, %v4450_v14 }
 0x4ab   :  { %3255 = vmatprep.mubr.msk.f32.mxu0 %vm85_vm0, %v4451_v10 }
 0x4ae   :  { %3256 = vmatmul.mubr.msk.f32.gmra.mrb[32].mxu0 %vm85_vm0, %v4452_v22 }
 0x4af   :  { %3258 = vmatprep.mubr.msk.f32.mxu0 %vm85_vm0, %v4453_v18 }
 0x4b2   :  { %3259 = vmatmul.mubr.msk.f32.gmra.mrb[34].mxu0 %vm85_vm0, %v4454_v36 }
 0x4b3   :  { %3261 = vmatprep.mubr.msk.f32.mxu0 %vm85_vm0, %v4455_v29 }
 0x4b6   :  { %3262 = vmatmul.mubr.msk.f32.gmra.mrb[36].mxu0 %vm85_vm0, %v4456_v49 }
 0x4b7   :  { %3264 = vmatprep.mubr.msk.f32.mxu0 %vm85_vm0, %v4457_v46 }
 0x4ba   :  { %3265 = vmatmul.mubr.msk.f32.gmra.mrb[38].mxu0 %vm85_vm0, %v4458_v56 }
 0x539   :  { %v3157_v32 = vpop.f32.mrb[16].mxu0 }
 0x53a   :  { %v1514_v2 = vpop.f32.mrb[17].mxu0  ;;  %v1795_v5 = vadd.f32 %v3157_v32, %v2681_v53 }
 0x53b   :  { %v1794_v1 = vadd.f32 %v2681_v53, %v1514_v2 }
 0x53d   :  { %v3160_v47 = vpop.f32.mrb[18].mxu0  ;;  %3271 = vmatprep.mubr.msk.f32.mxu0 %vm480_vm1, %v1794_v1 }
 0x53e   :  { %v1524_v60 = vpop.f32.mrb[19].mxu0  ;;  %3272 = vmatmul.mubr.msk.f32.vlgmr.msra.gmra.mrb[24].mxu0 %vm480_vm1, %v1795_v5  ;;  %v1797_v52 = vadd.f32 %v3160_v47, %v2681_v53 }
 0x53f   :  { %v1796_v20 = vadd.f32 %v2681_v53, %v1524_v60 }
 0x541   :  { %v3171_v54 = vpop.f32.mrb[64].mxu1  ;;  %3274 = vmatprep.mubr.msk.f32.mxu0 %vm480_vm1, %v1796_v20 }
 0x542   :  { %v1799_v12 = vadd.f32 %v3171_v54, %v2681_v53  ;;  %v1599_v55 = vpop.f32.mrb[65].mxu1  ;;  %3275 = vmatmul.mubr.msk.f32.gmra.mrb[26].mxu0 %vm480_vm1, %v1797_v52 }
 0x543   :  { %v1798_v19 = vadd.f32 %v2681_v53, %v1599_v55 }
 0x545   :  { %v3174_v45 = vpop.f32.mrb[66].mxu1  ;;  %3277 = vmatprep.mubr.msk.f32.mxu0 %vm480_vm1, %v1798_v19 }
 0x546   :  { %v1801_v21 = vadd.f32 %v3174_v45, %v2681_v53  ;;  %v1609_v24 = vpop.f32.mrb[67].mxu1  ;;  %3278 = vmatmul.mubr.msk.f32.gmra.mrb[28].mxu0 %vm480_vm1, %v1799_v12 }
 0x547   :  { %v1800_v58 = vadd.f32 %v2681_v53, %v1609_v24 }
 0x549   :  { %v3185_v30 = vpop.f32.mrb[20].mxu0  ;;  %3280 = vmatprep.mubr.msk.f32.mxu0 %vm480_vm1, %v1800_v58 }
 0x54a   :  { %v1803_v33 = vadd.f32 %v3185_v30, %v2681_v53  ;;  %v1684_v31 = vpop.f32.mrb[21].mxu0  ;;  %3281 = vmatmul.mubr.msk.f32.gmra.mrb[30].mxu0 %vm480_vm1, %v1801_v21 }
 0x54b   :  { %v1802_v48 = vadd.f32 %v2681_v53, %v1684_v31 }
 0x54d   :  { %v3188_v63 = vpop.f32.mrb[22].mxu0  ;;  %3283 = vmatprep.mubr.msk.f32.mxu0 %vm480_vm1, %v1802_v48 }
 0x54e   :  { %v1805_v4 = vadd.f32 %v3188_v63, %v2681_v53  ;;  %v1694_v27 = vpop.f32.mrb[23].mxu0  ;;  %3284 = vmatmul.mubr.msk.f32.gmra.mrb[32].mxu0 %vm480_vm1, %v1803_v33 }
 0x54f   :  { %v1804_v28 = vadd.f32 %v2681_v53, %v1694_v27 }
 0x551   :  { %v3199_v50 = vpop.f32.mrb[68].mxu1  ;;  %3286 = vmatprep.mubr.msk.f32.mxu0 %vm480_vm1, %v1804_v28 }
 0x552   :  { %v1807_v62 = vadd.f32 %v3199_v50, %v2681_v53  ;;  %v1769_v23 = vpop.f32.mrb[69].mxu1  ;;  %3287 = vmatmul.mubr.msk.f32.gmra.mrb[34].mxu0 %vm480_vm1, %v1805_v4 }
 0x553   :  { %v1806_v13 = vadd.f32 %v2681_v53, %v1769_v23 }
 0x555   :  { %v3202_v34 = vpop.f32.mrb[70].mxu1  ;;  %3289 = vmatprep.mubr.msk.f32.mxu0 %vm480_vm1, %v1806_v13 }
 0x556   :  { %v1809_v35 = vadd.f32 %v3202_v34, %v2681_v53  ;;  %v1779_v7 = vpop.f32.mrb[71].mxu1  ;;  %3290 = vmatmul.mubr.msk.f32.gmra.mrb[36].mxu0 %vm480_vm1, %v1807_v62 }
 0x557   :  { %v1808_v16 = vadd.f32 %v2681_v53, %v1779_v7 }
 0x559   :  { %3292 = vmatprep.mubr.msk.f32.mxu0 %vm480_vm1, %v1808_v16 }
 0x55a   :  { %3293 = vmatmul.mubr.msk.f32.gmra.mrb[38].mxu0 %vm480_vm1, %v1809_v35 }
 0x611   :  { %v3273_v38 = vpop.f32.mrb[24].mxu0 }
 0x612   :  { %v2375_v41 = vadd.f32 %v3273_v38, %v2730_v37  ;;  %v2272_v44 = vpop.f32.mrb[25].mxu0 }
 0x613   :  { %v2374_v40 = vadd.f32 %v2730_v37, %v2272_v44 }
 0x614   :  { %2392 = vmax.xlane.f32.xlu0 %v2375_v41 }
 0x615   :  { %v3276_v39 = vpop.f32.mrb[26].mxu0 }
 0x616   :  { %v2377_v42 = vadd.f32 %v3276_v39, %v2730_v37  ;;  %v2282_v0 = vpop.f32.mrb[27].mxu0 }
 0x617   :  { %v2376_v61 = vadd.f32 %v2730_v37, %v2282_v0 }
 0x618   :  { %2390 = vmax.xlane.f32.xlu0 %v2374_v40  ;;  %2396 = vmax.xlane.f32.xlu1 %v2377_v42 }
 0x619   :  { %v3279_v59 = vpop.f32.mrb[28].mxu0 }
 0x61a   :  { %v2292_v26 = vpop.f32.mrb[29].mxu0  ;;  %v2379_v9 = vadd.f32 %v3279_v59, %v2730_v37 }
 0x61b   :  { %v2378_v11 = vadd.f32 %v2730_v37, %v2292_v26 }
 0x61c   :  { %2394 = vmax.xlane.f32.xlu1 %v2376_v61 }
 0x61d   :  { %2398 = vmax.xlane.f32.xlu0 %v2378_v11  ;;  %v3282_v57 = vpop.f32.mrb[30].mxu0 }
 0x61e   :  { %v2302_v43 = vpop.f32.mrb[31].mxu0  ;;  %v2381_v25 = vadd.f32 %v3282_v57, %v2730_v37 }
 0x61f   :  { %v2380_v51 = vadd.f32 %v2730_v37, %v2302_v43 }
 0x620   :  { %2400 = vmax.xlane.f32.xlu1 %v2379_v9 }
 0x621   :  { %2402 = vmax.xlane.f32.xlu0 %v2380_v51  ;;  %v3285_v15 = vpop.f32.mrb[32].mxu0 }
 0x622   :  { %v2312_v17 = vpop.f32.mrb[33].mxu0  ;;  %v2383_v3 = vadd.f32 %v3285_v15, %v2730_v37 }
 0x623   :  { %v2382_v8 = vadd.f32 %v2730_v37, %v2312_v17 }
 0x624   :  { %2404 = vmax.xlane.f32.xlu1 %v2381_v25 }
 0x625   :  { %2406 = vmax.xlane.f32.xlu0 %v2382_v8  ;;  %v3288_v6 = vpop.f32.mrb[34].mxu0 }
 0x626   :  { %v2322_v14 = vpop.f32.mrb[35].mxu0  ;;  %v4297_v18 = vadd.f32 %v3288_v6, %v2730_v37 }
 0x627   :  { %v2384_v10 = vadd.f32 %v2730_v37, %v2322_v14 }
 0x628   :  { %2408 = vmax.xlane.f32.xlu1 %v2383_v3 }
 0x629   :  { %2410 = vmax.xlane.f32.xlu0 %v2384_v10  ;;  %v3291_v22 = vpop.f32.mrb[36].mxu0 }
 0x62a   :  { %v2332_v36 = vpop.f32.mrb[37].mxu0  ;;  %v4303_v46 = vadd.f32 %v3291_v22, %v2730_v37 }
 0x62b   :  { %v4299_v29 = vadd.f32 %v2730_v37, %v2332_v36 }
 0x62c   :  { %2412 = vmax.xlane.f32.xlu1 %v4297_v18 }
 0x62d   :  { %2414 = vmax.xlane.f32.xlu0 %v4299_v29  ;;  %v3294_v49 = vpop.f32.mrb[38].mxu0 }
 0x62e   :  { %v2342_v56 = vpop.f32.mrb[39].mxu0  ;;  %v4309_v32 = vadd.f32 %v3294_v49, %v2730_v37 }
 0x62f   :  { %v4305_v53 = vadd.f32 %v2730_v37, %v2342_v56 }
 0x630   :  { %2416 = vmax.xlane.f32.xlu1 %v4303_v46 }
 0x631   :  { %2418 = vmax.xlane.f32.xlu0 %v4305_v53 }
 0x634   :  { %2420 = vmax.xlane.f32.xlu1 %v4309_v32 }
 0x6a1   :  { %v2393_v2 = vpop.xlane.xlu0 %2392 }
 0x6a2   :  { %v4312_v1 = vsub.f32 %v2375_v41, %v2393_v2 }
 0x6a4   :  { %v2440_v5 = vmul.f32 1.442695, %v4312_v1 }
 0x6a5   :  { %v2391_v47 = vpop.xlane.xlu0 %2390  ;;  %v2397_v60 = vpop.xlane.xlu1 %2396 }
 0x6a6   :  { %3471 = vpow2.f32 %v2440_v5  ;;  %v4315_v20 = vsub.f32 %v2374_v40, %v2391_v47  ;;  %v4317_v52 = vsub.f32 %v2377_v42, %v2397_v60 }
 0x6a8   :  { %v2438_v54 = vmul.f32 1.442695, %v4315_v20  ;;  %v2444_v12 = vmul.f32 1.442695, %v4317_v52 }
 0x6a9   :  { %v2395_v55 = vpop.xlane.xlu1 %2394 }
 0x6aa   :  { %3473 = vpow2.f32 %v2438_v54  ;;  %v4321_v19 = vsub.f32 %v2376_v61, %v2395_v55  ;;  %v2399_v45 = vpop.xlane.xlu0 %2398 }
 0x6ab   :  { %3475 = vpow2.f32 %v2444_v12  ;;  %v4323_v21 = vsub.f32 %v2378_v11, %v2399_v45 }
 0x6ac   :  { %v2442_v24 = vmul.f32 1.442695, %v4321_v19 }
 0x6ad   :  { %v2446_v58 = vmul.f32 1.442695, %v4323_v21  ;;  %v2401_v30 = vpop.xlane.xlu1 %2400 }
 0x6ae   :  { %3477 = vpow2.f32 %v2442_v24  ;;  %v4327_v33 = vsub.f32 %v2379_v9, %v2401_v30  ;;  %v2403_v31 = vpop.xlane.xlu0 %2402 }
 0x6af   :  { %v4329_v48 = vsub.f32 %v2380_v51, %v2403_v31  ;;  %3479 = vpow2.f32 %v2446_v58 }
 0x6b0   :  { %v3472_v63 = vpop.eup %3471  ;;  %v2448_v4 = vmul.f32 1.442695, %v4327_v33 }
 0x6b1   :  { %v2450_v27 = vmul.f32 1.442695, %v4329_v48  ;;  %v2405_v28 = vpop.xlane.xlu1 %2404  ;;  %2472 = vadd.xlane.f32.xlu1 %v3472_v63 }
 0x6b2   :  { %3481 = vpow2.f32 %v2448_v4  ;;  %v4333_v50 = vsub.f32 %v2381_v25, %v2405_v28  ;;  %v2407_v62 = vpop.xlane.xlu0 %2406 }
 0x6b3   :  { %v4335_v23 = vsub.f32 %v2382_v8, %v2407_v62  ;;  %3483 = vpow2.f32 %v2450_v27 }
 0x6b4   :  { %v3474_v13 = vpop.eup %3473  ;;  %v2452_v34 = vmul.f32 1.442695, %v4333_v50 }
 0x6b5   :  { %v3476_v35 = vpop.eup %3475  ;;  %v2454_v7 = vmul.f32 1.442695, %v4335_v23  ;;  %v2409_v16 = vpop.xlane.xlu1 %2408  ;;  %2470 = vadd.xlane.f32.xlu0 %v3474_v13 }
 0x6b6   :  { %3485 = vpow2.f32 %v2452_v34  ;;  %v4339_v37 = vsub.f32 %v2383_v3, %v2409_v16  ;;  %2476 = vadd.xlane.f32.xlu1 %v3476_v35  ;;  %v2411_v38 = vpop.xlane.xlu0 %2410 }
 0x6b7   :  { %v4341_v41 = vsub.f32 %v2384_v10, %v2411_v38  ;;  %3487 = vpow2.f32 %v2454_v7 }
 0x6b8   :  { %v3478_v44 = vpop.eup %3477  ;;  %v2456_v39 = vmul.f32 1.442695, %v4339_v37 }
 0x6b9   :  { %v2458_v40 = vmul.f32 1.442695, %v4341_v41  ;;  %v2413_v42 = vpop.xlane.xlu1 %2412  ;;  %2474 = vadd.xlane.f32.xlu0 %v3478_v44  ;;  %v3480_v61 = vpop.eup %3479 }
 0x6ba   :  { %3489 = vpow2.f32 %v2456_v39  ;;  %v4346_v0 = vsub.f32 %v4297_v18, %v2413_v42  ;;  %v2415_v59 = vpop.xlane.xlu0 %2414 }
 0x6bb   :  { %v4349_v26 = vsub.f32 %v4299_v29, %v2415_v59  ;;  %3491 = vpow2.f32 %v2458_v40 }
 0x6bc   :  { %v3482_v11 = vpop.eup %3481  ;;  %v2460_v57 = vmul.f32 1.442695, %v4346_v0 }
 0x6bd   :  { %v2462_v9 = vmul.f32 1.442695, %v4349_v26  ;;  %v2417_v43 = vpop.xlane.xlu1 %2416  ;;  %2480 = vadd.xlane.f32.xlu1 %v3482_v11  ;;  %2478 = vadd.xlane.f32.xlu0 %v3480_v61  ;;  %v3484_v25 = vpop.eup %3483 }
 0x6be   :  { %3493 = vpow2.f32 %v2460_v57  ;;  %v4354_v51 = vsub.f32 %v4303_v46, %v2417_v43  ;;  %v2419_v15 = vpop.xlane.xlu0 %2418 }
 0x6bf   :  { %v4357_v17 = vsub.f32 %v4305_v53, %v2419_v15  ;;  %3495 = vpow2.f32 %v2462_v9 }
 0x6c0   :  { %v3486_v8 = vpop.eup %3485  ;;  %v2464_v6 = vmul.f32 1.442695, %v4354_v51 }
 0x6c1   :  { %v2466_v3 = vmul.f32 1.442695, %v4357_v17  ;;  %2484 = vadd.xlane.f32.xlu1 %v3486_v8  ;;  %v2421_v14 = vpop.xlane.xlu1 %2420  ;;  %2482 = vadd.xlane.f32.xlu0 %v3484_v25  ;;  %v3488_v22 = vpop.eup %3487 }
 0x6c2   :  { %3497 = vpow2.f32 %v2464_v6  ;;  %v4362_v10 = vsub.f32 %v4309_v32, %v2421_v14 }
 0x6c3   :  { %3499 = vpow2.f32 %v2466_v3 }
 0x6c4   :  { %v3490_v18 = vpop.eup %3489  ;;  %v2468_v36 = vmul.f32 1.442695, %v4362_v10 }
 0x6c5   :  { %2488 = vadd.xlane.f32.xlu1 %v3490_v18  ;;  %2486 = vadd.xlane.f32.xlu0 %v3488_v22  ;;  %v3492_v29 = vpop.eup %3491 }
 0x6c6   :  { %3501 = vpow2.f32 %v2468_v36 }
 0x6c8   :  { %v3494_v49 = vpop.eup %3493 }
 0x6c9   :  { %2492 = vadd.xlane.f32.xlu1 %v3494_v49  ;;  %2490 = vadd.xlane.f32.xlu0 %v3492_v29  ;;  %v3496_v46 = vpop.eup %3495 }
 0x6cc   :  { %v3498_v56 = vpop.eup %3497 }
 0x6cd   :  { %2496 = vadd.xlane.f32.xlu1 %v3498_v56  ;;  %2494 = vadd.xlane.f32.xlu0 %v3496_v46  ;;  %v3500_v53 = vpop.eup %3499 }
 0x6d0   :  { %v3502_v2 = vpop.eup %3501 }
 0x6d1   :  { %2500 = vadd.xlane.f32.xlu1 %v3502_v2  ;;  %2498 = vadd.xlane.f32.xlu0 %v3500_v53 }
 0x73e   :  { %v2473_v32 = vpop.xlane.xlu1 %2472 }
 0x73f   :  { %3503 = vlog2.f32 %v2473_v32 }
 0x742   :  { %v2471_v5 = vpop.xlane.xlu0 %2470 }
 0x743   :  { %v2477_v47 = vpop.xlane.xlu1 %2476  ;;  %3505 = vlog2.f32 %v2471_v5 }
 0x744   :  { %3507 = vlog2.f32 %v2477_v47 }
 0x746   :  { %v2475_v60 = vpop.xlane.xlu0 %2474 }
 0x747   :  { %3509 = vlog2.f32 %v2475_v60 }
 0x749   :  { %v3504_v54 = vpop.eup %3503 }
 0x74a   :  { %v2505_v12 = vmul.f32 0.6931472, %v3504_v54  ;;  %v2481_v55 = vpop.xlane.xlu1 %2480  ;;  %v2479_v45 = vpop.xlane.xlu0 %2478 }
 0x74b   :  { %3511 = vlog2.f32 %v2481_v55 }
 0x74c   :  { %v2535_v24 = vsub.f32 %v4312_v1, %v2505_v12  ;;  %3513 = vlog2.f32 %v2479_v45 }
 0x74d   :  { %v3506_v58 = vpop.eup %3505 }
 0x74e   :  { %v3508_v30 = vpop.eup %3507  ;;  %2551 = vst [vmem:[#allocation5 + $0x8] sm:$0xff] %v2535_v24  ;;  %v2503_v31 = vmul.f32 0.6931472, %v3506_v58  ;;  %v2485_v63 = vpop.xlane.xlu1 %2484 }
 0x74f   :  { %v2483_v4 = vpop.xlane.xlu0 %2482  ;;  %v2509_v27 = vmul.f32 0.6931472, %v3508_v30  ;;  %3515 = vlog2.f32 %v2485_v63 }
 0x750   :  { %v2534_v28 = vsub.f32 %v4315_v20, %v2503_v31  ;;  %3517 = vlog2.f32 %v2483_v4 }
 0x751   :  { %v3510_v62 = vpop.eup %3509  ;;  %v2537_v13 = vsub.f32 %v4317_v52, %v2509_v27 }
 0x752   :  { %2550 = vst [vmem:[#allocation5] sm:$0xff] %v2534_v28  ;;  %v2507_v34 = vmul.f32 0.6931472, %v3510_v62  ;;  %v2489_v35 = vpop.xlane.xlu1 %2488 }
 0x753   :  { %v2487_v7 = vpop.xlane.xlu0 %2486  ;;  %2553 = vst [vmem:[#allocation5 + $0x18] sm:$0xff] %v2537_v13  ;;  %3519 = vlog2.f32 %v2489_v35 }
 0x754   :  { %v2536_v1 = vsub.f32 %v4321_v19, %v2507_v34  ;;  %3521 = vlog2.f32 %v2487_v7 }
 0x755   :  { %v3512_v16 = vpop.eup %3511 }
 0x756   :  { %v3514_v38 = vpop.eup %3513  ;;  %2552 = vst [vmem:[#allocation5 + $0x10] sm:$0xff] %v2536_v1  ;;  %v2513_v44 = vmul.f32 0.6931472, %v3512_v16  ;;  %v2493_v39 = vpop.xlane.xlu1 %2492 }
 0x757   :  { %v2491_v40 = vpop.xlane.xlu0 %2490  ;;  %v2511_v20 = vmul.f32 0.6931472, %v3514_v38  ;;  %3523 = vlog2.f32 %v2493_v39 }
 0x758   :  { %v2539_v42 = vsub.f32 %v4327_v33, %v2513_v44  ;;  %3525 = vlog2.f32 %v2491_v40 }
 0x759   :  { %v3516_v52 = vpop.eup %3515  ;;  %v2538_v59 = vsub.f32 %v4323_v21, %v2511_v20 }
 0x75a   :  { %v3518_v61 = vpop.eup %3517  ;;  %2555 = vst [vmem:[#allocation5 + $0x28] sm:$0xff] %v2539_v42  ;;  %v2517_v11 = vmul.f32 0.6931472, %v3516_v52  ;;  %v2497_v57 = vpop.xlane.xlu1 %2496 }
 0x75b   :  { %v2495_v19 = vpop.xlane.xlu0 %2494  ;;  %2554 = vst [vmem:[#allocation5 + $0x20] sm:$0xff] %v2538_v59  ;;  %v2515_v9 = vmul.f32 0.6931472, %v3518_v61  ;;  %3527 = vlog2.f32 %v2497_v57 }
 0x75c   :  { %v2541_v43 = vsub.f32 %v4333_v50, %v2517_v11  ;;  %3529 = vlog2.f32 %v2495_v19 }
 0x75d   :  { %v3520_v15 = vpop.eup %3519  ;;  %v2540_v25 = vsub.f32 %v4329_v48, %v2515_v9 }
 0x75e   :  { %v3522_v8 = vpop.eup %3521  ;;  %2557 = vst [vmem:[#allocation5 + $0x38] sm:$0xff] %v2541_v43  ;;  %v2521_v33 = vmul.f32 0.6931472, %v3520_v15  ;;  %v2501_v6 = vpop.xlane.xlu1 %2500 }
 0x75f   :  { %v2499_v3 = vpop.xlane.xlu0 %2498  ;;  %2556 = vst [vmem:[#allocation5 + $0x30] sm:$0xff] %v2540_v25  ;;  %v2519_v21 = vmul.f32 0.6931472, %v3522_v8  ;;  %3531 = vlog2.f32 %v2501_v6 }
 0x760   :  { %v2543_v14 = vsub.f32 %v4339_v37, %v2521_v33  ;;  %3533 = vlog2.f32 %v2499_v3 }
 0x761   :  { %v3524_v22 = vpop.eup %3523  ;;  %v2542_v18 = vsub.f32 %v4335_v23, %v2519_v21 }
 0x762   :  { %v3526_v36 = vpop.eup %3525  ;;  %2559 = vst [vmem:[#allocation5 + $0x48] sm:$0xff] %v2543_v14  ;;  %v2525_v50 = vmul.f32 0.6931472, %v3524_v22 }
 0x763   :  { %2558 = vst [vmem:[#allocation5 + $0x40] sm:$0xff] %v2542_v18  ;;  %v2523_v29 = vmul.f32 0.6931472, %v3526_v36 }
 0x764   :  { %v2545_v48 = vsub.f32 %v4346_v0, %v2525_v50 }
 0x765   :  { %v3528_v49 = vpop.eup %3527  ;;  %v2544_v46 = vsub.f32 %v4341_v41, %v2523_v29 }
 0x766   :  { %v3530_v56 = vpop.eup %3529  ;;  %2561 = vst [vmem:[#allocation5 + $0x58] sm:$0xff] %v2545_v48  ;;  %v2529_v53 = vmul.f32 0.6931472, %v3528_v49 }
 0x767   :  { %2560 = vst [vmem:[#allocation5 + $0x50] sm:$0xff] %v2544_v46  ;;  %v2527_v2 = vmul.f32 0.6931472, %v3530_v56 }
 0x768   :  { %v2547_v37 = vsub.f32 %v4354_v51, %v2529_v53 }
 0x769   :  { %v3532_v32 = vpop.eup %3531  ;;  %v2546_v23 = vsub.f32 %v4349_v26, %v2527_v2 }
 0x76a   :  { %v3534_v5 = vpop.eup %3533  ;;  %2563 = vst [vmem:[#allocation5 + $0x68] sm:$0xff] %v2547_v37  ;;  %v2533_v47 = vmul.f32 0.6931472, %v3532_v32 }
 0x76b   :  { %2562 = vst [vmem:[#allocation5 + $0x60] sm:$0xff] %v2546_v23  ;;  %v2531_v0 = vmul.f32 0.6931472, %v3534_v5 }
 0x76c   :  { %v2549_v60 = vsub.f32 %v4362_v10, %v2533_v47 }
 0x76d   :  { %v2548_v41 = vsub.f32 %v4357_v17, %v2531_v0 }
 0x76e   :  { %2565 = vst [vmem:[#allocation5 + $0x78] sm:$0xff] %v2549_v60 }
 0x76f   :  { %2564 = vst [vmem:[#allocation5 + $0x70] sm:$0xff] %v2548_v41 }
 0x770   :  { %3568 = shalt.err (!%p3565_p12)
}
 0x771   :  { %s3569_s6 = scalar_lea.hbm %s4406_s10, 2048 }
 0x772   :  { %p3570_p13 = scmp.ne.s32.totalorder %s4406_s10, %s3569_s6  ;;  %p3573_p0 = scmp.lt.u32.totalorder %s3569_s6, %s4406_s10 }
 0x774   :  { %p3575_p1 = pnand %p3573_p0, %p3570_p13 }
 0x776   :  { %3578 = shalt.err (!%p3575_p1)
}
 0x777   :  { %2577 = dma.vmem_to_hbm [thread:$0]  %s2572_s27, 2048, %s4406_s10, [#allocation4], %s3584_s23, %s3584_s23, %s3585_s24  }
 0x778   :  { %3581 = dma.done.wait [#allocation4], 2048  }
 0x779   :  { %3582 = vsyncadd [#allocation4], 4294965248 }
 0x77a   :  { %2581 = vsyncpa [#allocation3], 1 }
 0x77b   :  { %2582 = vsyncpa [#allocation4], 1 }

</bundles_post_ra>
